<compile_context>
chip_gen: v7x
topology: tpu7x:2x2x1
jax: 0.10.0
libtpu: 0.0.40
codegen_flags: <defaults>
</compile_context>

<pallas_src>
import jax
import jax.numpy as jnp
from jax.experimental import pallas as pl
from jax.experimental.pallas import tpu as pltpu

N_EMBD = 64
N_HEAD = 4
HEAD_SIZE = N_EMBD // N_HEAD
BLOCK_SIZE = 32          # max sequence length (causal mask size)
LN_EPS = 1e-5
NEG_INF = -1e30          # large finite negative additive mask (no NaN risk)
MATMUL_DTYPE = jnp.bfloat16   # MXU-native input dtype; accumulation is f32


def _layer_norm(x, gamma, beta):
    # x: (M, C) f32, gamma/beta: (1, C) f32
    mu = jnp.mean(x, axis=-1, keepdims=True)
    var = jnp.mean((x - mu) ** 2, axis=-1, keepdims=True)
    return (x - mu) * jax.lax.rsqrt(var + LN_EPS) * gamma + beta


def block_kernel(x_ref,
                 ln1_g_ref, ln1_b_ref,
                 wqkv_ref, wp_ref, bp_ref,
                 ln2_g_ref, ln2_b_ref,
                 w1_ref, b1_ref, w2_ref, b2_ref,
                 o_ref):
    Bb, T, C = x_ref.shape
    H = N_HEAD
    hs = C // H
    mm = MATMUL_DTYPE

    x = x_ref[...].reshape(Bb * T, C).astype(jnp.float32)       # (Bb*T, C)

    # ---- LayerNorm 1 (f32) ----
    xn = _layer_norm(x, ln1_g_ref[...], ln1_b_ref[...])

    # ---- fused QKV projection: single (Bb*T, C) @ (C, 3C) matmul ----
    qkv = jnp.dot(xn.astype(mm), wqkv_ref[...],
                  preferred_element_type=jnp.float32)           # (Bb*T, 3C)

    # ---- stack heads as (Bb*H, T, hs) via static lane slices ----
    def head_slab(base):
        return jnp.stack(
            [qkv[b * T:(b + 1) * T, base + h * hs: base + (h + 1) * hs]
             for b in range(Bb) for h in range(H)], axis=0)

    q = head_slab(0)
    k = head_slab(C)
    v = head_slab(2 * C)

    # ---- causal self-attention, batched over (Bb*H) heads ----
    # NOTE: reference scales by n_embd**-0.5 (C ** -0.5), NOT head_size**-0.5.
    scale = C ** (-0.5)
    row = jax.lax.broadcasted_iota(jnp.int32, (T, T), 0)
    col = jax.lax.broadcasted_iota(jnp.int32, (T, T), 1)
    mask_add = jnp.where(row >= col, 0.0, NEG_INF).astype(jnp.float32)  # (T, T)

    s = jnp.einsum('hqd,hkd->hqk', q.astype(mm), k.astype(mm),
                   preferred_element_type=jnp.float32) * scale
    s = s + mask_add                                            # additive mask
    m = jnp.max(s, axis=-1, keepdims=True)
    p = jnp.exp(s - m)
    denom = jnp.sum(p, axis=-1, keepdims=True)                  # (Bb*H, T, 1)
    ctx = jnp.einsum('hqk,hkd->hqd', p.astype(mm), v.astype(mm),
                     preferred_element_type=jnp.float32)        # (Bb*H, T, hs)
    ctx = ctx * pl.reciprocal(denom, approx=True)               # normalize on EUP

    # ---- re-pack heads to (Bb*T, C); single output projection ----
    ctx_flat = jnp.concatenate(
        [jnp.concatenate([ctx[b * H + h] for h in range(H)], axis=-1)
         for b in range(Bb)], axis=0)                           # (Bb*T, C)
    sa = jnp.dot(ctx_flat.astype(mm), wp_ref[...],
                 preferred_element_type=jnp.float32) + bp_ref[...]

    x1 = x + sa                                                 # first residual

    # ---- LayerNorm 2 + FeedForward (Linear -> ReLU -> Linear) ----
    x2n = _layer_norm(x1, ln2_g_ref[...], ln2_b_ref[...])
    h1 = jnp.dot(x2n.astype(mm), w1_ref[...],
                 preferred_element_type=jnp.float32) + b1_ref[...]
    h1 = jnp.maximum(h1, 0.0)
    ff = jnp.dot(h1.astype(mm), w2_ref[...],
                 preferred_element_type=jnp.float32) + b2_ref[...]

    o_ref[...] = (x1 + ff).reshape(Bb, T, C).astype(o_ref.dtype)  # 2nd residual


def transformer_block(x, params):
    B, T, C = x.shape
    assert C == N_EMBD and T <= BLOCK_SIZE
    mm = MATMUL_DTYPE

    # Repack weights once outside the kernel: fused lane-dense QKV (C, 3C),
    # bf16 matmul inputs (halves weight DMA bytes; f32 accumulate in-kernel).
    wqkv = jnp.concatenate(
        [params["wq"], params["wk"], params["wv"]], axis=1).astype(mm)   # (C, 3C)
    plist = [
        params["ln1_g"], params["ln1_b"],
        wqkv, params["wp"].astype(mm), params["bp"],
        params["ln2_g"], params["ln2_b"],
        params["w1"].astype(mm), params["b1"],
        params["w2"].astype(mm), params["b2"],
    ]

    # At most 2 grid steps: one batch block per TensorCore on v7x, otherwise a
    # single step. Whole problem (~0.3 MiB) fits VMEM on every generation.
    n_steps = 2 if (B >= 2 and B % 2 == 0) else 1
    b_blk = B // n_steps

    def full_spec(arr):
        nd = arr.ndim
        return pl.BlockSpec(arr.shape, lambda i, _nd=nd: (0,) * _nd)

    in_specs = [pl.BlockSpec((b_blk, T, C), lambda i: (i, 0, 0))]
    in_specs += [full_spec(p) for p in plist]

    return pl.pallas_call(
        block_kernel,
        out_shape=jax.ShapeDtypeStruct((B, T, C), jnp.float32),
        grid_spec=pltpu.PrefetchScalarGridSpec(
            num_scalar_prefetch=0,
            grid=(n_steps,),
            in_specs=in_specs,
            out_specs=pl.BlockSpec((b_blk, T, C), lambda i: (i, 0, 0)),
        ),
        compiler_params=pltpu.CompilerParams(
            dimension_semantics=("parallel",)),
    )(x, *plist)


def init_params(key):
    ks = jax.random.split(key, 6)
    s = 0.02
    # All projection weights stored lane-dense 2-D (in, out); head h of
    # wq/wk/wv occupies output columns [h*HEAD_SIZE : (h+1)*HEAD_SIZE]
    # (same as torch.cat over heads). Biases stored (1, N).
    return {
        "ln1_g": jnp.ones((1, N_EMBD), jnp.float32),
        "ln1_b": jnp.zeros((1, N_EMBD), jnp.float32),
        "wq": s * jax.random.normal(ks[0], (N_EMBD, N_EMBD), jnp.float32),
        "wk": s * jax.random.normal(ks[1], (N_EMBD, N_EMBD), jnp.float32),
        "wv": s * jax.random.normal(ks[2], (N_EMBD, N_EMBD), jnp.float32),
        "wp": s * jax.random.normal(ks[3], (N_EMBD, N_EMBD), jnp.float32),
        "bp": jnp.zeros((1, N_EMBD), jnp.float32),
        "ln2_g": jnp.ones((1, N_EMBD), jnp.float32),
        "ln2_b": jnp.zeros((1, N_EMBD), jnp.float32),
        "w1": s * jax.random.normal(ks[4], (N_EMBD, 4 * N_EMBD), jnp.float32),
        "b1": jnp.zeros((1, 4 * N_EMBD), jnp.float32),
        "w2": s * jax.random.normal(ks[5], (4 * N_EMBD, N_EMBD), jnp.float32),
        "b2": jnp.zeros((1, N_EMBD), jnp.float32),
    }


if __name__ == "__main__":
    key = jax.random.PRNGKey(0)
    k_x, k_p = jax.random.split(key)

    B, T, C = 2, BLOCK_SIZE, N_EMBD          # (2, 32, 64)
    x = jax.random.normal(k_x, (B, T, C), jnp.float32)
    params = init_params(k_p)

    out = jax.block_until_ready(transformer_block(x, params))

    assert out.shape == (B, T, C) and out.dtype == jnp.float32
    assert bool(jnp.all(jnp.isfinite(out)))
    print("KERNEL_OK")
</pallas_src>

<mosaic_0001>
module attributes {stable_mosaic.version = 11 : i64} {
  func.func @block_kernel(%arg0: i32, %arg1: memref<1x32x64xf32, #tpu.memory_space<vmem>>, %arg2: memref<1x64xf32, #tpu.memory_space<vmem>>, %arg3: memref<1x64xf32, #tpu.memory_space<vmem>>, %arg4: memref<64x192xbf16, #tpu.memory_space<vmem>>, %arg5: memref<64x64xbf16, #tpu.memory_space<vmem>>, %arg6: memref<1x64xf32, #tpu.memory_space<vmem>>, %arg7: memref<1x64xf32, #tpu.memory_space<vmem>>, %arg8: memref<1x64xf32, #tpu.memory_space<vmem>>, %arg9: memref<64x256xbf16, #tpu.memory_space<vmem>>, %arg10: memref<1x256xf32, #tpu.memory_space<vmem>>, %arg11: memref<256x64xbf16, #tpu.memory_space<vmem>>, %arg12: memref<1x64xf32, #tpu.memory_space<vmem>>, %arg13: memref<1x32x64xf32, #tpu.memory_space<vmem>>) attributes {dimension_semantics = [#tpu.dimension_semantics<parallel>], iteration_bounds = array<i64: 2>, scalar_prefetch = 0 : i64, scratch_operands = 0 : i64, tpu.core_type = #tpu.core_type<tc>, window_params = [{transform_indices = @transform_0, window_bounds = array<i64: 1, 32, 64>}, {pipeline_mode = #tpu.pipeline_mode<synchronous>, transform_indices = @transform_1, window_bounds = array<i64: 1, 64>}, {pipeline_mode = #tpu.pipeline_mode<synchronous>, transform_indices = @transform_2, window_bounds = array<i64: 1, 64>}, {pipeline_mode = #tpu.pipeline_mode<synchronous>, transform_indices = @transform_3, window_bounds = array<i64: 64, 192>}, {pipeline_mode = #tpu.pipeline_mode<synchronous>, transform_indices = @transform_4, window_bounds = array<i64: 64, 64>}, {pipeline_mode = #tpu.pipeline_mode<synchronous>, transform_indices = @transform_5, window_bounds = array<i64: 1, 64>}, {pipeline_mode = #tpu.pipeline_mode<synchronous>, transform_indices = @transform_6, window_bounds = array<i64: 1, 64>}, {pipeline_mode = #tpu.pipeline_mode<synchronous>, transform_indices = @transform_7, window_bounds = array<i64: 1, 64>}, {pipeline_mode = #tpu.pipeline_mode<synchronous>, transform_indices = @transform_8, window_bounds = array<i64: 64, 256>}, {pipeline_mode = #tpu.pipeline_mode<synchronous>, transform_indices = @transform_9, window_bounds = array<i64: 1, 256>}, {pipeline_mode = #tpu.pipeline_mode<synchronous>, transform_indices = @transform_10, window_bounds = array<i64: 256, 64>}, {pipeline_mode = #tpu.pipeline_mode<synchronous>, transform_indices = @transform_11, window_bounds = array<i64: 1, 64>}, {transform_indices = @transform_12, window_bounds = array<i64: 1, 32, 64>}]} {
    %c0 = arith.constant 0 : index
    %c0_0 = arith.constant 0 : index
    %c0_1 = arith.constant 0 : index
    %0 = vector.load %arg1[%c0, %c0_0, %c0_1] : memref<1x32x64xf32, #tpu.memory_space<vmem>>, vector<1x32x64xf32>
    %1 = vector.shape_cast %0 : vector<1x32x64xf32> to vector<32x64xf32>
    %c0_2 = arith.constant 0 : index
    %c0_3 = arith.constant 0 : index
    %2 = vector.load %arg2[%c0_2, %c0_3] : memref<1x64xf32, #tpu.memory_space<vmem>>, vector<1x64xf32>
    %c0_4 = arith.constant 0 : index
    %c0_5 = arith.constant 0 : index
    %3 = vector.load %arg3[%c0_4, %c0_5] : memref<1x64xf32, #tpu.memory_space<vmem>>, vector<1x64xf32>
    %cst = arith.constant dense<0.000000e+00> : vector<32xf32>
    %4 = vector.multi_reduction <add>, %1, %cst [1] : vector<32x64xf32> to vector<32xf32>
    %5 = vector.shape_cast %4 : vector<32xf32> to vector<32x1xf32>
    %cst_6 = arith.constant 6.400000e+01 : f32
    %6 = vector.broadcast %cst_6 : f32 to vector<32x1xf32>
    %7 = arith.divf %5, %6 : vector<32x1xf32>
    %8 = vector.broadcast %7 : vector<32x1xf32> to vector<32x64xf32>
    %9 = arith.subf %1, %8 : vector<32x64xf32>
    %10 = arith.mulf %9, %9 : vector<32x64xf32>
    %cst_7 = arith.constant dense<0.000000e+00> : vector<32xf32>
    %11 = vector.multi_reduction <add>, %10, %cst_7 [1] : vector<32x64xf32> to vector<32xf32>
    %12 = vector.shape_cast %11 : vector<32xf32> to vector<32x1xf32>
    %cst_8 = arith.constant 6.400000e+01 : f32
    %13 = vector.broadcast %cst_8 : f32 to vector<32x1xf32>
    %14 = arith.divf %12, %13 : vector<32x1xf32>
    %15 = vector.broadcast %7 : vector<32x1xf32> to vector<32x64xf32>
    %16 = arith.subf %1, %15 : vector<32x64xf32>
    %cst_9 = arith.constant 9.99999974E-6 : f32
    %17 = vector.broadcast %cst_9 : f32 to vector<32x1xf32>
    %18 = arith.addf %14, %17 : vector<32x1xf32>
    %19 = math.rsqrt %18 : vector<32x1xf32>
    %20 = vector.broadcast %19 : vector<32x1xf32> to vector<32x64xf32>
    %21 = arith.mulf %16, %20 : vector<32x64xf32>
    %22 = vector.broadcast %2 : vector<1x64xf32> to vector<32x64xf32>
    %23 = arith.mulf %21, %22 : vector<32x64xf32>
    %24 = vector.broadcast %3 : vector<1x64xf32> to vector<32x64xf32>
    %25 = arith.addf %23, %24 : vector<32x64xf32>
    %26 = arith.truncf %25 : vector<32x64xf32> to vector<32x64xbf16>
    %c0_10 = arith.constant 0 : index
    %c0_11 = arith.constant 0 : index
    %27 = vector.load %arg4[%c0_10, %c0_11] : memref<64x192xbf16, #tpu.memory_space<vmem>>, vector<64x192xbf16>
    %cst_12 = arith.constant dense<0.000000e+00> : vector<32x192xf32>
    %28 = tpu.matmul %26, %27, %cst_12 {dimension_numbers = #tpu.dot_dimension_numbers<[1], [0], [0], [1], [0, 0, 1, 1], [], []>} : vector<32x64xbf16>, vector<64x192xbf16>, vector<32x192xf32> -> vector<32x192xf32>
    %29 = vector.extract_strided_slice %28 {offsets = [0, 0], sizes = [32, 16], strides = [1, 1]} : vector<32x192xf32> to vector<32x16xf32>
    %30 = vector.extract_strided_slice %28 {offsets = [0, 16], sizes = [32, 16], strides = [1, 1]} : vector<32x192xf32> to vector<32x16xf32>
    %31 = vector.extract_strided_slice %28 {offsets = [0, 32], sizes = [32, 16], strides = [1, 1]} : vector<32x192xf32> to vector<32x16xf32>
    %32 = vector.extract_strided_slice %28 {offsets = [0, 48], sizes = [32, 16], strides = [1, 1]} : vector<32x192xf32> to vector<32x16xf32>
    %33 = vector.shape_cast %29 : vector<32x16xf32> to vector<1x32x16xf32>
    %34 = vector.shape_cast %30 : vector<32x16xf32> to vector<1x32x16xf32>
    %35 = vector.shape_cast %31 : vector<32x16xf32> to vector<1x32x16xf32>
    %36 = vector.shape_cast %32 : vector<32x16xf32> to vector<1x32x16xf32>
    %37 = tpu.concatenate %33, %34, %35, %36 in 0 : vector<1x32x16xf32>, vector<1x32x16xf32>, vector<1x32x16xf32>, vector<1x32x16xf32> -> vector<4x32x16xf32>
    %38 = vector.extract_strided_slice %28 {offsets = [0, 64], sizes = [32, 16], strides = [1, 1]} : vector<32x192xf32> to vector<32x16xf32>
    %39 = vector.extract_strided_slice %28 {offsets = [0, 80], sizes = [32, 16], strides = [1, 1]} : vector<32x192xf32> to vector<32x16xf32>
    %40 = vector.extract_strided_slice %28 {offsets = [0, 96], sizes = [32, 16], strides = [1, 1]} : vector<32x192xf32> to vector<32x16xf32>
    %41 = vector.extract_strided_slice %28 {offsets = [0, 112], sizes = [32, 16], strides = [1, 1]} : vector<32x192xf32> to vector<32x16xf32>
    %42 = vector.shape_cast %38 : vector<32x16xf32> to vector<1x32x16xf32>
    %43 = vector.shape_cast %39 : vector<32x16xf32> to vector<1x32x16xf32>
    %44 = vector.shape_cast %40 : vector<32x16xf32> to vector<1x32x16xf32>
    %45 = vector.shape_cast %41 : vector<32x16xf32> to vector<1x32x16xf32>
    %46 = tpu.concatenate %42, %43, %44, %45 in 0 : vector<1x32x16xf32>, vector<1x32x16xf32>, vector<1x32x16xf32>, vector<1x32x16xf32> -> vector<4x32x16xf32>
    %47 = vector.extract_strided_slice %28 {offsets = [0, 128], sizes = [32, 16], strides = [1, 1]} : vector<32x192xf32> to vector<32x16xf32>
    %48 = vector.extract_strided_slice %28 {offsets = [0, 144], sizes = [32, 16], strides = [1, 1]} : vector<32x192xf32> to vector<32x16xf32>
    %49 = vector.extract_strided_slice %28 {offsets = [0, 160], sizes = [32, 16], strides = [1, 1]} : vector<32x192xf32> to vector<32x16xf32>
    %50 = vector.extract_strided_slice %28 {offsets = [0, 176], sizes = [32, 16], strides = [1, 1]} : vector<32x192xf32> to vector<32x16xf32>
    %51 = vector.shape_cast %47 : vector<32x16xf32> to vector<1x32x16xf32>
    %52 = vector.shape_cast %48 : vector<32x16xf32> to vector<1x32x16xf32>
    %53 = vector.shape_cast %49 : vector<32x16xf32> to vector<1x32x16xf32>
    %54 = vector.shape_cast %50 : vector<32x16xf32> to vector<1x32x16xf32>
    %55 = tpu.concatenate %51, %52, %53, %54 in 0 : vector<1x32x16xf32>, vector<1x32x16xf32>, vector<1x32x16xf32>, vector<1x32x16xf32> -> vector<4x32x16xf32>
    %56 = tpu.iota {dimensions = array<i32: 0>} : vector<32x32xi32>
    %57 = tpu.iota {dimensions = array<i32: 1>} : vector<32x32xi32>
    %58 = arith.cmpi sge, %56, %57 : vector<32x32xi32>
    %cst_13 = arith.constant 0.000000e+00 : f32
    %cst_14 = arith.constant -1.000000e+30 : f32
    %59 = vector.broadcast %cst_13 : f32 to vector<32x32xf32>
    %60 = vector.broadcast %cst_14 : f32 to vector<32x32xf32>
    %61 = arith.select %58, %59, %60 : vector<32x32xi1>, vector<32x32xf32>
    %62 = arith.truncf %37 : vector<4x32x16xf32> to vector<4x32x16xbf16>
    %63 = arith.truncf %46 : vector<4x32x16xf32> to vector<4x32x16xbf16>
    "tpu.trace_start"() <{level = 10 : i32, message = "hqd,hkd->hqk"}> : () -> ()
    %cst_15 = arith.constant dense<0.000000e+00> : vector<4x32x32xf32>
    %64 = tpu.matmul %62, %63, %cst_15 {dimension_numbers = #tpu.dot_dimension_numbers<[2], [2], [1], [1], [0, 0, 0, 1, 1, 1], [0], [0]>} : vector<4x32x16xbf16>, vector<4x32x16xbf16>, vector<4x32x32xf32> -> vector<4x32x32xf32>
    "tpu.trace_stop"() : () -> ()
    %cst_16 = arith.constant 1.250000e-01 : f32
    %65 = vector.broadcast %cst_16 : f32 to vector<4x32x32xf32>
    %66 = arith.mulf %64, %65 : vector<4x32x32xf32>
    %67 = vector.shape_cast %61 : vector<32x32xf32> to vector<1x32x32xf32>
    %68 = vector.broadcast %67 : vector<1x32x32xf32> to vector<4x32x32xf32>
    %69 = arith.addf %66, %68 : vector<4x32x32xf32>
    %cst_17 = arith.constant dense<0xFF800000> : vector<4x32xf32>
    %70 = vector.multi_reduction <maximumf>, %69, %cst_17 [2] : vector<4x32x32xf32> to vector<4x32xf32>
    %71 = vector.shape_cast %70 : vector<4x32xf32> to vector<4x32x1xf32>
    %72 = vector.broadcast %71 : vector<4x32x1xf32> to vector<4x32x32xf32>
    %73 = arith.subf %69, %72 : vector<4x32x32xf32>
    %74 = math.exp %73 : vector<4x32x32xf32>
    %cst_18 = arith.constant dense<0.000000e+00> : vector<4x32xf32>
    %75 = vector.multi_reduction <add>, %74, %cst_18 [2] : vector<4x32x32xf32> to vector<4x32xf32>
    %76 = vector.shape_cast %75 : vector<4x32xf32> to vector<4x32x1xf32>
    %77 = arith.truncf %74 : vector<4x32x32xf32> to vector<4x32x32xbf16>
    %78 = arith.truncf %55 : vector<4x32x16xf32> to vector<4x32x16xbf16>
    "tpu.trace_start"() <{level = 10 : i32, message = "hqk,hkd->hqd"}> : () -> ()
    %cst_19 = arith.constant dense<0.000000e+00> : vector<4x32x16xf32>
    %79 = tpu.matmul %77, %78, %cst_19 {dimension_numbers = #tpu.dot_dimension_numbers<[2], [1], [1], [2], [0, 0, 0, 1, 1, 2], [0], [0]>} : vector<4x32x32xbf16>, vector<4x32x16xbf16>, vector<4x32x16xf32> -> vector<4x32x16xf32>
    "tpu.trace_stop"() : () -> ()
    %80 = tpu.reciprocal %76 {approx = true} : vector<4x32x1xf32> -> vector<4x32x1xf32>
    %81 = vector.broadcast %80 : vector<4x32x1xf32> to vector<4x32x16xf32>
    %82 = arith.mulf %79, %81 : vector<4x32x16xf32>
    %83 = vector.extract_strided_slice %82 {offsets = [0, 0, 0], sizes = [1, 32, 16], strides = [1, 1, 1]} : vector<4x32x16xf32> to vector<1x32x16xf32>
    %84 = vector.shape_cast %83 : vector<1x32x16xf32> to vector<32x16xf32>
    %85 = vector.extract_strided_slice %82 {offsets = [1, 0, 0], sizes = [1, 32, 16], strides = [1, 1, 1]} : vector<4x32x16xf32> to vector<1x32x16xf32>
    %86 = vector.shape_cast %85 : vector<1x32x16xf32> to vector<32x16xf32>
    %87 = vector.extract_strided_slice %82 {offsets = [2, 0, 0], sizes = [1, 32, 16], strides = [1, 1, 1]} : vector<4x32x16xf32> to vector<1x32x16xf32>
    %88 = vector.shape_cast %87 : vector<1x32x16xf32> to vector<32x16xf32>
    %89 = vector.extract_strided_slice %82 {offsets = [3, 0, 0], sizes = [1, 32, 16], strides = [1, 1, 1]} : vector<4x32x16xf32> to vector<1x32x16xf32>
    %90 = vector.shape_cast %89 : vector<1x32x16xf32> to vector<32x16xf32>
    %91 = tpu.concatenate %84, %86, %88, %90 in 1 : vector<32x16xf32>, vector<32x16xf32>, vector<32x16xf32>, vector<32x16xf32> -> vector<32x64xf32>
    %92 = arith.truncf %91 : vector<32x64xf32> to vector<32x64xbf16>
    %c0_20 = arith.constant 0 : index
    %c0_21 = arith.constant 0 : index
    %93 = vector.load %arg5[%c0_20, %c0_21] : memref<64x64xbf16, #tpu.memory_space<vmem>>, vector<64x64xbf16>
    %cst_22 = arith.constant dense<0.000000e+00> : vector<32x64xf32>
    %94 = tpu.matmul %92, %93, %cst_22 {dimension_numbers = #tpu.dot_dimension_numbers<[1], [0], [0], [1], [0, 0, 1, 1], [], []>} : vector<32x64xbf16>, vector<64x64xbf16>, vector<32x64xf32> -> vector<32x64xf32>
    %c0_23 = arith.constant 0 : index
    %c0_24 = arith.constant 0 : index
    %95 = vector.load %arg6[%c0_23, %c0_24] : memref<1x64xf32, #tpu.memory_space<vmem>>, vector<1x64xf32>
    %96 = vector.broadcast %95 : vector<1x64xf32> to vector<32x64xf32>
    %97 = arith.addf %94, %96 : vector<32x64xf32>
    %98 = arith.addf %1, %97 : vector<32x64xf32>
    %c0_25 = arith.constant 0 : index
    %c0_26 = arith.constant 0 : index
    %99 = vector.load %arg7[%c0_25, %c0_26] : memref<1x64xf32, #tpu.memory_space<vmem>>, vector<1x64xf32>
    %c0_27 = arith.constant 0 : index
    %c0_28 = arith.constant 0 : index
    %100 = vector.load %arg8[%c0_27, %c0_28] : memref<1x64xf32, #tpu.memory_space<vmem>>, vector<1x64xf32>
    %cst_29 = arith.constant dense<0.000000e+00> : vector<32xf32>
    %101 = vector.multi_reduction <add>, %98, %cst_29 [1] : vector<32x64xf32> to vector<32xf32>
    %102 = vector.shape_cast %101 : vector<32xf32> to vector<32x1xf32>
    %cst_30 = arith.constant 6.400000e+01 : f32
    %103 = vector.broadcast %cst_30 : f32 to vector<32x1xf32>
    %104 = arith.divf %102, %103 : vector<32x1xf32>
    %105 = vector.broadcast %104 : vector<32x1xf32> to vector<32x64xf32>
    %106 = arith.subf %98, %105 : vector<32x64xf32>
    %107 = arith.mulf %106, %106 : vector<32x64xf32>
    %cst_31 = arith.constant dense<0.000000e+00> : vector<32xf32>
    %108 = vector.multi_reduction <add>, %107, %cst_31 [1] : vector<32x64xf32> to vector<32xf32>
    %109 = vector.shape_cast %108 : vector<32xf32> to vector<32x1xf32>
    %cst_32 = arith.constant 6.400000e+01 : f32
    %110 = vector.broadcast %cst_32 : f32 to vector<32x1xf32>
    %111 = arith.divf %109, %110 : vector<32x1xf32>
    %112 = vector.broadcast %104 : vector<32x1xf32> to vector<32x64xf32>
    %113 = arith.subf %98, %112 : vector<32x64xf32>
    %cst_33 = arith.constant 9.99999974E-6 : f32
    %114 = vector.broadcast %cst_33 : f32 to vector<32x1xf32>
    %115 = arith.addf %111, %114 : vector<32x1xf32>
    %116 = math.rsqrt %115 : vector<32x1xf32>
    %117 = vector.broadcast %116 : vector<32x1xf32> to vector<32x64xf32>
    %118 = arith.mulf %113, %117 : vector<32x64xf32>
    %119 = vector.broadcast %99 : vector<1x64xf32> to vector<32x64xf32>
    %120 = arith.mulf %118, %119 : vector<32x64xf32>
    %121 = vector.broadcast %100 : vector<1x64xf32> to vector<32x64xf32>
    %122 = arith.addf %120, %121 : vector<32x64xf32>
    %123 = arith.truncf %122 : vector<32x64xf32> to vector<32x64xbf16>
    %c0_34 = arith.constant 0 : index
    %c0_35 = arith.constant 0 : index
    %124 = vector.load %arg9[%c0_34, %c0_35] : memref<64x256xbf16, #tpu.memory_space<vmem>>, vector<64x256xbf16>
    %cst_36 = arith.constant dense<0.000000e+00> : vector<32x256xf32>
    %125 = tpu.matmul %123, %124, %cst_36 {dimension_numbers = #tpu.dot_dimension_numbers<[1], [0], [0], [1], [0, 0, 1, 1], [], []>} : vector<32x64xbf16>, vector<64x256xbf16>, vector<32x256xf32> -> vector<32x256xf32>
    %c0_37 = arith.constant 0 : index
    %c0_38 = arith.constant 0 : index
    %126 = vector.load %arg10[%c0_37, %c0_38] : memref<1x256xf32, #tpu.memory_space<vmem>>, vector<1x256xf32>
    %127 = vector.broadcast %126 : vector<1x256xf32> to vector<32x256xf32>
    %128 = arith.addf %125, %127 : vector<32x256xf32>
    %cst_39 = arith.constant 0.000000e+00 : f32
    %129 = vector.broadcast %cst_39 : f32 to vector<32x256xf32>
    %130 = arith.maximumf %128, %129 : vector<32x256xf32>
    %131 = arith.truncf %130 : vector<32x256xf32> to vector<32x256xbf16>
    %c0_40 = arith.constant 0 : index
    %c0_41 = arith.constant 0 : index
    %132 = vector.load %arg11[%c0_40, %c0_41] : memref<256x64xbf16, #tpu.memory_space<vmem>>, vector<256x64xbf16>
    %cst_42 = arith.constant dense<0.000000e+00> : vector<32x64xf32>
    %133 = tpu.matmul %131, %132, %cst_42 {dimension_numbers = #tpu.dot_dimension_numbers<[1], [0], [0], [1], [0, 0, 1, 1], [], []>} : vector<32x256xbf16>, vector<256x64xbf16>, vector<32x64xf32> -> vector<32x64xf32>
    %c0_43 = arith.constant 0 : index
    %c0_44 = arith.constant 0 : index
    %134 = vector.load %arg12[%c0_43, %c0_44] : memref<1x64xf32, #tpu.memory_space<vmem>>, vector<1x64xf32>
    %135 = vector.broadcast %134 : vector<1x64xf32> to vector<32x64xf32>
    %136 = arith.addf %133, %135 : vector<32x64xf32>
    %137 = arith.addf %98, %136 : vector<32x64xf32>
    %138 = vector.shape_cast %137 : vector<32x64xf32> to vector<1x32x64xf32>
    %c0_45 = arith.constant 0 : index
    %c0_46 = arith.constant 0 : index
    %c0_47 = arith.constant 0 : index
    %139 = vector.load %arg13[%c0_45, %c0_46, %c0_47] : memref<1x32x64xf32, #tpu.memory_space<vmem>>, vector<1x32x64xf32>
    tpu.vector_store %arg13[%c0_45, %c0_46, %c0_47], %138 {strides = array<i32>} : memref<1x32x64xf32, #tpu.memory_space<vmem>>, vector<1x32x64xf32>,
    return
  }
  func.func @transform_0(%arg0: i32) -> (i32, i32, i32) {
    %c0_i32 = arith.constant 0 : i32
    %c0_i32_0 = arith.constant 0 : i32
    %c0_i32_1 = arith.constant 0 : i32
    return %arg0, %c0_i32, %c0_i32_0 : i32, i32, i32
  }
  func.func @transform_1(%arg0: i32) -> (i32, i32) {
    %c0_i32 = arith.constant 0 : i32
    %c0_i32_0 = arith.constant 0 : i32
    %c0_i32_1 = arith.constant 0 : i32
    return %c0_i32, %c0_i32_0 : i32, i32
  }
  func.func @transform_2(%arg0: i32) -> (i32, i32) {
    %c0_i32 = arith.constant 0 : i32
    %c0_i32_0 = arith.constant 0 : i32
    %c0_i32_1 = arith.constant 0 : i32
    return %c0_i32, %c0_i32_0 : i32, i32
  }
  func.func @transform_3(%arg0: i32) -> (i32, i32) {
    %c0_i32 = arith.constant 0 : i32
    %c0_i32_0 = arith.constant 0 : i32
    %c0_i32_1 = arith.constant 0 : i32
    return %c0_i32, %c0_i32_0 : i32, i32
  }
  func.func @transform_4(%arg0: i32) -> (i32, i32) {
    %c0_i32 = arith.constant 0 : i32
    %c0_i32_0 = arith.constant 0 : i32
    %c0_i32_1 = arith.constant 0 : i32
    return %c0_i32, %c0_i32_0 : i32, i32
  }
  func.func @transform_5(%arg0: i32) -> (i32, i32) {
    %c0_i32 = arith.constant 0 : i32
    %c0_i32_0 = arith.constant 0 : i32
    %c0_i32_1 = arith.constant 0 : i32
    return %c0_i32, %c0_i32_0 : i32, i32
  }
  func.func @transform_6(%arg0: i32) -> (i32, i32) {
    %c0_i32 = arith.constant 0 : i32
    %c0_i32_0 = arith.constant 0 : i32
    %c0_i32_1 = arith.constant 0 : i32
    return %c0_i32, %c0_i32_0 : i32, i32
  }
  func.func @transform_7(%arg0: i32) -> (i32, i32) {
    %c0_i32 = arith.constant 0 : i32
    %c0_i32_0 = arith.constant 0 : i32
    %c0_i32_1 = arith.constant 0 : i32
    return %c0_i32, %c0_i32_0 : i32, i32
  }
  func.func @transform_8(%arg0: i32) -> (i32, i32) {
    %c0_i32 = arith.constant 0 : i32
    %c0_i32_0 = arith.constant 0 : i32
    %c0_i32_1 = arith.constant 0 : i32
    return %c0_i32, %c0_i32_0 : i32, i32
  }
  func.func @transform_9(%arg0: i32) -> (i32, i32) {
    %c0_i32 = arith.constant 0 : i32
    %c0_i32_0 = arith.constant 0 : i32
    %c0_i32_1 = arith.constant 0 : i32
    return %c0_i32, %c0_i32_0 : i32, i32
  }
  func.func @transform_10(%arg0: i32) -> (i32, i32) {
    %c0_i32 = arith.constant 0 : i32
    %c0_i32_0 = arith.constant 0 : i32
    %c0_i32_1 = arith.constant 0 : i32
    return %c0_i32, %c0_i32_0 : i32, i32
  }
  func.func @transform_11(%arg0: i32) -> (i32, i32) {
    %c0_i32 = arith.constant 0 : i32
    %c0_i32_0 = arith.constant 0 : i32
    %c0_i32_1 = arith.constant 0 : i32
    return %c0_i32, %c0_i32_0 : i32, i32
  }
  func.func @transform_12(%arg0: i32) -> (i32, i32, i32) {
    %c0_i32 = arith.constant 0 : i32
    %c0_i32_0 = arith.constant 0 : i32
    %c0_i32_1 = arith.constant 0 : i32
    return %arg0, %c0_i32, %c0_i32_0 : i32, i32, i32
  }
}

</mosaic_0001>

<bundles_post_ra>
// kernel: tpu_custom_call.1
= control target key start
LH: loop header
LB: loop body
LE: loop exit
PB: predicated region body
PF: predicated region fallthrough
CT: control target
= control target key end

     0   :  { %17 = vsyncpa [#allocation3], 0  ;;  %s3361_s0 = inlined_call_operand.vmem [shape: f32[2,32,64], index: 0, kind: input, shape index: {}]   ;;  %s3362_s1 = inlined_call_operand.vmem [shape: f32[1,64], index: 1, kind: input, shape index: {}]   ;;  %s3363_s2 = inlined_call_operand.vmem [shape: f32[1,64], index: 2, kind: input, shape index: {}]   ;;  %s3364_s3 = inlined_call_operand.vmem [shape: bf16[64,192], index: 3, kind: input, shape index: {}]   ;;  %s3365_s4 = inlined_call_operand.hbm [shape: bf16[64,64], index: 4, kind: input, shape index: {}]   ;;  %s3366_s5 = inlined_call_operand.vmem [shape: f32[1,64], index: 5, kind: input, shape index: {}]   ;;  %s3367_s6 = inlined_call_operand.vmem [shape: f32[1,64], index: 6, kind: input, shape index: {}]   ;;  %s3368_s7 = inlined_call_operand.vmem [shape: f32[1,64], index: 7, kind: input, shape index: {}]   ;;  %s3369_s8 = inlined_call_operand.vmem [shape: bf16[64,256], index: 8, kind: input, shape index: {}]   ;;  %s3370_s9 = inlined_call_operand.vmem [shape: f32[1,256], index: 9, kind: input, shape index: {}]   ;;  %s3371_s10 = inlined_call_operand.vmem [shape: bf16[256,64], index: 10, kind: input, shape index: {}]   ;;  %s3372_s11 = inlined_call_operand.vmem [shape: f32[1,64], index: 11, kind: input, shape index: {}]   ;;  %s3373_s12 = inlined_call_operand.hbm [shape: f32[2,32,64], index: 12, kind: output, shape index: {}]  }
   0x1   :  { %18 = vsyncpa [#allocation4], 0 }
   0x2   :  { %20 = vsyncpa [#allocation4 + $0x1], 0  ;;  %s2769_s21 = smov 0   ;;  %s2771_s22 = smov 0  }
   0x3   :  { %s2773_s23 = smov 0   ;;  %s2775_s24 = smov 0  }
   0x4 LB: > { %3378 = sst [smem:[#allocation8_spill]] %s2683_s23  ;;  %s2790_s25 = sadd.s32 4294967295, %s2687_s24   ;;  %s2687_s24 = sphi %s2775_s24, %s3393_s24   ;;  %s2683_s23 = sphi %s2773_s23, %s3390_s23   ;;  %s2679_s22 = sphi %s2771_s22, %s3392_s22   ;;  %s2675_s21 = sphi %s2769_s21, %s3391_s21  }
   0x5   : > { %s2082_s26 = sadd.s32 4294967294, %s2687_s24   ;;  %s2794_s27 = sadd.s32 1, %s2687_s24  }
   0x6   : > { %s290_s28 = sadd.s32 1, %s2683_s23  ;;  %s287_s29 = ssub.s32 %s2687_s24, %s2794_s27 }
   0x7   : > { %p300_p0 = scmp.ne.s32.totalorder %s2683_s23, %s2679_s22  ;;  %p288_p1 = scmp.eq.s32.totalorder %s287_s29, 0 }
   0x8   : > { %p301_p2 = scmp.eq.s32.totalorder %s2790_s25, 1  ;;  %p306_p3 = scmp.ne.s32.totalorder %s2679_s22, %s2675_s21 }
   0x9   : > { %p307_p4 = scmp.eq.s32.totalorder %s2082_s26, 1  ;;  %p2083_p7 = scmp.ge.s32.totalorder %s2687_s24, 1 }
   0xa   : > { %s2805_s30 = scalar_select %p288_p1, %s2683_s23, %s290_s28  }
   0xb   : > { %p2807_p5 = por %p301_p2, %p300_p0  ;;  %p2811_p6 = por %p307_p4, %p306_p3 }
   0xc   : > { %3379 = sst [smem:[#allocation9_spill]] %s2805_s30  ;;  %p314_p8 = scmp.lt.s32.totalorder %s2687_s24, 3 }
   0xd   : > { %s3380_s13 = scalar_select %p2807_p5, 1, 0 }
   0xe   : > { %s3381_s14 = scalar_select %p2811_p6, 1, 0 }
   0xf   : > { %p3375_p9 = scmp.eq.s32.totalorder %s2790_s25, 0  ;;  %p2818_p10 = pnand %p2083_p7, %p314_p8 }
  0x10   : > { %s2689_s16 = smov [#allocation2]   ;;  %s2593_s26 = scalar_lea.hbm %s3365_s4, 512 }
  0x11   : > { %s3382_s15 = scalar_select %p2818_p10, 1, 0 }
  0x12   : > { %s335_s17 = sshll.u32 %s2689_s16, 4  ;;  %p2318_p11 = pneg %p2818_p10  ;;  %s336_s17 = int_to_ptr.vmem [resolvable:$true] %s335_s17 }
  0x13   : > { %p2594_p13 = scmp.ne.s32.totalorder %s3365_s4, %s2593_s26  ;;  %p2600_p3 = scmp.lt.u32.totalorder %s2593_s26, %s3365_s4 }
  0x14   : > { %p2826_p12 = pnand %p3375_p9, %p2318_p11 }
  0x16   : > { %p2595_p0 = pneg %p2826_p12 }
  0x18   : > { %p2596_p1 = pnand %p2595_p0, %p2594_p13 }
  0x1a   : > { %p2597_p2 = pneg %p2596_p1 }
  0x1c   : > { %p2602_p4 = pnand %p2600_p3, %p2597_p2 }
  0x1e   : > { %2605 = shalt.err (!%p2602_p4)
}
  0x1f   : > { %s2606_s23 = scalar_lea.vmem %s336_s17, 512  ;;  %p2614_p9 = scmp.lt.s32.totalorder %s336_s17, %s336_s17 }
  0x20   : > { %p2607_p7 = scmp.ne.s32.totalorder %s336_s17, %s2606_s23  ;;  %p2615_p6 = scmp.lt.s32.totalorder %s2606_s23, %s2606_s23 }
  0x22   : > { %p2609_p8 = pnand %p2607_p7, %p2595_p0  ;;  %p2616_p5 = por %p2615_p6, %p2614_p9 }
  0x24   : > { %p2610_p11 = pneg %p2609_p8 }
  0x26   : > { %p2617_p10 = pnand %p2616_p5, %p2610_p11 }
  0x28   : > { %2620 = shalt.err (!%p2617_p10)
}
  0x29   : > { %s2690_s19 = smov 64   ;;  %s2691_s20 = smov 4  }
  0x2a   : > { %2321 = dma.hbm_to_vmem [thread:$0]  (!%p2826_p12), %s3365_s4, 512, %s336_s17, [#allocation3], %s2690_s19, %s2690_s19, %s2691_s20  }
  0x2b   : > { %p3384_p13 = scmp.ne.s32.totalorder %s3382_s15, 0 }
  0x2c   : > { %p3385_p1 = scmp.eq.s32.totalorder (!%p3384_p13), %s2790_s25, 0 }
  0x2d   : > { %380 = sbr.rel (%p3384_p13) target bundleno = 2592 (0xa20), region = 68 }
  0x34   : > { %2666 = dma.done.wait (%p3385_p1), [#allocation3], 512   ;;  %p3386_p0 = pmov %p3385_p1 }
  0x35   : > { %p422_p5 = scmp.lt.s32.totalorder %s2790_s25, 1  ;;  %vm434_vm0 = vcmask 523264   ;;  %v2465_v28 = vld [vmem:[%s3364_s3 + $0x4] ss:$8 sps:$4 sm:$0xff]   ;;  %v2467_v29 = vld [vmem:[%s3364_s3] ss:$8 sps:$4 sm:$0xff]  }
  0x36   : > { %2668 = vsyncadd (%p3386_p0), [#allocation3], 4294966784  ;;  %564 = vmatprep.subr.bf16.mxu1 %v2465_v28  ;;  %v2468_v30 = vld [vmem:[%s3364_s3 + $0x14] ss:$8 sps:$4 sm:$0xff]   ;;  %v2470_v31 = vld [vmem:[%s3364_s3 + $0x10] ss:$8 sps:$4 sm:$0xff]  }
  0x37   : > { %s423_s23 = scalar_select %p422_p5, %s2790_s25, 1  ;;  %565 = vmatpush1.bf16.msra.mxu1 %v2467_v29  ;;  %v2471_v32 = vld [vmem:[%s3364_s3 + $0x24] ss:$8 sps:$4 sm:$0xff]   ;;  %v2473_v33 = vld [vmem:[%s3364_s3 + $0x20] ss:$8 sps:$4 sm:$0xff]   ;;  %v2692_v36 = vmov 0  }
  0x38   : > { %566 = vmatprep.subr.bf16.mxu1 %v2468_v30  ;;  %v2474_v34 = vld [vmem:[%s3364_s3 + $0x34] ss:$8 sps:$4 sm:$0xff]   ;;  %v2476_v35 = vld [vmem:[%s3364_s3 + $0x30] ss:$8 sps:$4 sm:$0xff]   ;;  %596 = vmatprep.mubr.bf16.mxu1 %v2692_v36  ;;  %v2091_v51 = vld [vmem:[%s3362_s1] ss:$0 sm:$0xff] }
  0x39   : > { %s2160_s30 = sshll.u32 %s423_s23, 5  ;;  %v2092_v56 = vld [vmem:[%s3363_s2] ss:$0 sm:$0xff]  ;;  %vm726_vm1 = vcmask 130048   ;;  %s2693_s15 = smov 112   ;;  %vm1021_vm5 = vcmask 261120  }
  0x3a   : > { %s2857_s16 = scalar_lea.vmem %s3361_s0, %s2160_s30  ;;  %s2694_s17 = smov 96   ;;  %vm1490_vm7 = vcmask 392192  }
  0x3b   : > { %v428_v0 = vld [vmem:[%s2857_s16] sm:$0xff]  ;;  %v430_v1 = vld [vmem:[%s2857_s16 + $0x10] sm:$0xff]  ;;  %v429_v2 = vld [vmem:[%s2857_s16 + $0x8] sm:$0xff]  ;;  %567 = vmatpush1.bf16.msra.mxu1 %v2470_v31  ;;  %s2695_s19 = smov 64   ;;  %s2696_s20 = smov 80  }
  0x3c   : > { %v435_v3 = vsel %vm434_vm0, %v428_v0, 0.0  ;;  %v441_v4 = vsel %vm434_vm0, %v430_v1, 0.0  ;;  %v431_v5 = vld [vmem:[%s2857_s16 + $0x18] sm:$0xff]  ;;  %v438_v6 = vsel %vm434_vm0, %v429_v2, 0.0  ;;  %568 = vmatprep.subr.bf16.mxu1 %v2471_v32  ;;  %s2698_s28 = smov 16   ;;  %s2699_s29 = smov 32  }
  0x3d   : > { %436 = vadd.xlane.f32.xlu0 %v435_v3  ;;  %442 = vadd.xlane.f32.xlu1 %v441_v4  ;;  %v444_v7 = vsel %vm434_vm0, %v431_v5, 0.0  ;;  %s2700_s23 = smov 48   ;;  %s419_s26 = sand.u32 1, %s2679_s22  }
  0x3e   : > { %p3387_p9 = scmp.ne.s32.totalorder %s3380_s13, 0 }
  0x3f   : > { %569 = vmatpush1.bf16.msra.mxu1 %v2473_v33 }
  0x40   : > { %570 = vmatprep.subr.bf16.mxu1 %v2474_v34 }
  0x41   : > { %439 = vadd.xlane.f32.xlu0 %v438_v6  ;;  %445 = vadd.xlane.f32.xlu1 %v444_v7 }
  0x43   : > { %571 = vmatpush1.bf16.msra.mxu1 %v2476_v35 }
  0xca   : > { %v437_v8 = vpop.xlane.xlu0 %436  ;;  %v443_v9 = vpop.xlane.xlu1 %442 }
  0xcb   : > { %v448_v10 = vmul.f32 0.015625, %v437_v8  ;;  %v450_v11 = vmul.f32 0.015625, %v443_v9 }
  0xcd   : > { %v452_v12 = vsub.f32 %v428_v0, %v448_v10  ;;  %v2867_v13 = vsub.f32 %v430_v1, %v450_v11 }
  0xce   : > { %v440_v14 = vpop.xlane.xlu0 %439  ;;  %v446_v15 = vpop.xlane.xlu1 %445 }
  0xcf   : > { %v449_v16 = vmul.f32 0.015625, %v440_v14  ;;  %v451_v17 = vmul.f32 0.015625, %v446_v15  ;;  %v456_v18 = vmul.f32 %v452_v12, %v452_v12  ;;  %v458_v19 = vmul.f32 %v2867_v13, %v2867_v13 }
  0xd1   : > { %v453_v20 = vsub.f32 %v429_v2, %v449_v16  ;;  %v455_v21 = vsub.f32 %v431_v5, %v451_v17  ;;  %v460_v22 = vsel %vm434_vm0, %v456_v18, 0.0  ;;  %v466_v23 = vsel %vm434_vm0, %v458_v19, 0.0 }
  0xd2   : > { %461 = vadd.xlane.f32.xlu0 %v460_v22 }
  0xd3   : > { %v457_v24 = vmul.f32 %v453_v20, %v453_v20  ;;  %v459_v25 = vmul.f32 %v455_v21, %v455_v21 }
  0xd5   : > { %v463_v26 = vsel %vm434_vm0, %v457_v24, 0.0  ;;  %v469_v27 = vsel %vm434_vm0, %v459_v25, 0.0 }
  0xd6   : > { %467 = vadd.xlane.f32.xlu0 %v466_v23  ;;  %464 = vadd.xlane.f32.xlu1 %v463_v26 }
  0xda   : > { %470 = vadd.xlane.f32.xlu1 %v469_v27 }
 0x15f   : > { %v462_v37 = vpop.xlane.xlu0 %461 }
 0x160   : > { %v472_v38 = vmul.f32 0.015625, %v462_v37 }
 0x162   : > { %v476_v39 = vadd.f32 1e-05, %v472_v38 }
 0x163   : > { %v465_v40 = vpop.xlane.xlu1 %464  ;;  %v468_v41 = vpop.xlane.xlu0 %467 }
 0x164   : > { %2509 = vrsqrt.f32 %v476_v39  ;;  %v473_v42 = vmul.f32 0.015625, %v465_v40  ;;  %v474_v43 = vmul.f32 0.015625, %v468_v41 }
 0x166   : > { %v477_v44 = vadd.f32 1e-05, %v473_v42  ;;  %v478_v45 = vadd.f32 1e-05, %v474_v43 }
 0x167   : > { %v471_v46 = vpop.xlane.xlu1 %470 }
 0x168   : > { %2511 = vrsqrt.f32 %v477_v44  ;;  %v475_v47 = vmul.f32 0.015625, %v471_v46 }
 0x169   : > { %2513 = vrsqrt.f32 %v478_v45 }
 0x16a   : > { %v479_v48 = vadd.f32 1e-05, %v475_v47 }
 0x16c   : > { %2515 = vrsqrt.f32 %v479_v48 }
 0x16e   : > { %v2510_v49 = vpop.eup %2509 }
 0x16f   : > { %v484_v50 = vmul.f32 %v2510_v49, %v452_v12 }
 0x171   : > { %v494_v54 = vmul.f32 %v2091_v51, %v484_v50 }
 0x172   : > { %v2512_v52 = vpop.eup %2511 }
 0x173   : > { %v485_v53 = vmul.f32 %v2512_v52, %v453_v20  ;;  %v2514_v55 = vpop.eup %2513  ;;  %v504_v61 = vadd.f32 %v2092_v56, %v494_v54 }
 0x174   : > { %v486_v59 = vmul.f32 %v2514_v55, %v2867_v13 }
 0x175   : > { %v495_v57 = vmul.f32 %v2091_v51, %v485_v53 }
 0x176   : > { %v2516_v58 = vpop.eup %2515  ;;  %v496_v1 = vmul.f32 %v2091_v51, %v486_v59 }
 0x177   : > { %v487_v60 = vmul.f32 %v2516_v58, %v455_v21  ;;  %v505_v62 = vadd.f32 %v2092_v56, %v495_v57 }
 0x178   : > { %v506_v3 = vadd.f32 %v2092_v56, %v496_v1 }
 0x179   : > { %v508_v63 = vpack.c.bf16 %v505_v62, %v504_v61  ;;  %v497_v0 = vmul.f32 %v2091_v51, %v487_v60 }
 0x17b   : > { %2101 = vmatmul.mubr.msk.bf16.vlgmr.msra.gmra.mrb[0].mxu1 %vm434_vm0, %v508_v63  ;;  %v507_v2 = vadd.f32 %v2092_v56, %v497_v0 }
 0x17c   : > { %606 = vmatprep.mubr.bf16.mxu1 %v2692_v36 }
 0x17d   : > { %v509_v4 = vpack.c.bf16 %v507_v2, %v506_v3 }
 0x183   : > { %2102 = vmatmul.mubr.msk.bf16.gmra.mrb[4].mxu1 %vm434_vm0, %v509_v4 }
 0x24e   : > { %v598_v5 = vpop.f32.mrb[0].mxu1 }
 0x24f   : > { %v600_v6 = vpop.f32.mrb[1].mxu1 }
 0x250   : > { %v602_v7 = vpop.f32.mrb[2].mxu1 }
 0x251   : > { %v712_v8 = vpack.c.bf16 %v602_v7, %v598_v5  ;;  %v604_v9 = vpop.f32.mrb[3].mxu1  ;;  %v2375_v10 = vpack.i.bf16 %v602_v7, %v598_v5  ;;  %v697_v7 = vlaneseq }
 0x252   : > { %v2910_v11 = vpack.i.bf16 %v604_v9, %v600_v6  ;;  %v2912_v12 = vpack.c.bf16 %v604_v9, %v600_v6 }
 0x253   : > { %2376 = vrot.lane.b32.xlu0 %v2375_v10, %s2693_s15  ;;  %2232 = vmatprep.mubr.msk.bf16.mxu1 %vm726_vm1, %v712_v8 }
 0x256   : > { %v608_v13 = vpop.f32.mrb[4].mxu1 }
 0x257   : > { %v610_v14 = vpop.f32.mrb[5].mxu1 }
 0x258   : > { %v612_v15 = vpop.f32.mrb[6].mxu1 }
 0x259   : > { %v614_v16 = vpop.f32.mrb[7].mxu1  ;;  %v2395_v17 = vpack.i.bf16 %v612_v15, %v608_v13  ;;  %v713_v18 = vpack.c.bf16 %v612_v15, %v608_v13 }
 0x25a   : > { %v2916_v19 = vpack.i.bf16 %v614_v16, %v610_v14  ;;  %v2918_v20 = vpack.c.bf16 %v614_v16, %v610_v14  ;;  %v2697_v14 = vmov -1e+30  }
 0x25b   : > { %2396 = vrot.lane.b32.xlu0 %v2395_v17, %s2694_s17  ;;  %2381 = vrot.lane.b32.xlu1 %v2395_v17, %s2693_s15 }
 0x25f   : > { %722 = vrot.lane.b32.xlu0 %v712_v8, %s2695_s19  ;;  %2386 = vrot.lane.b32.xlu1 %v2375_v10, %s2694_s17  ;;  %v2973_v8 = vshrl.u32 %v697_v7, 7 }
 0x261   : > { %v700_v9 = vadd.s32 16, %v2973_v8 }
 0x263   : > { %2391 = vrot.lane.b32.xlu1 %v2375_v10, %s2696_s20  ;;  %724 = vrot.lane.b32.xlu0 %v713_v18, %s2695_s19  ;;  %v703_v10 = vand.u32 127, %v697_v7 }
 0x265   : > { %vm706_vm2 = vcmp.ge.s32.totalorder %v700_v9, %v703_v10  ;;  %vm704_vm3 = vcmp.ge.s32.totalorder %v2973_v8, %v703_v10 }
 0x266   : > { %v2979_v15 = vsel %vm706_vm2, 0.0, %v2697_v14 }
 0x267   : > { %2401 = vrot.lane.b32.xlu1 %v2395_v17, %s2696_s20 }
 0x2c5   : > { %v2377_v21 = vpop.permute.xlu0 %2376 }
 0x2c6   : > { %v2379_v22 = vunpack.i.h.bf16 %v2377_v21  ;;  %v2378_v23 = vunpack.i.l.bf16 %v2377_v21  ;;  %v2981_v21 = vsel %vm704_vm3, 0.0, %v2697_v14 }
 0x2c8   : > { %v714_v24 = vpack.c.bf16 %v2379_v22, %v2378_v23 }
 0x2ca   : > { %790 = vrot.lane.b32.xlu1 %v714_v24, %s2695_s19  ;;  %2240 = vmatprep.mubr.msk.bf16.mxu0 %vm726_vm1, %v714_v24 }
 0x2cd   : > { %v2382_v25 = vpop.permute.xlu1 %2381  ;;  %v2397_v26 = vpop.permute.xlu0 %2396 }
 0x2ce   : > { %v2384_v27 = vunpack.i.h.bf16 %v2382_v25  ;;  %v2383_v28 = vunpack.i.l.bf16 %v2382_v25  ;;  %v2399_v35 = vunpack.i.h.bf16 %v2397_v26  ;;  %v2398_v37 = vunpack.i.l.bf16 %v2397_v26 }
 0x2d0   : > { %v715_v29 = vpack.c.bf16 %v2384_v27, %v2383_v28  ;;  %v717_v43 = vpack.c.bf16 %v2399_v35, %v2398_v37 }
 0x2d1   : > { %v2387_v30 = vpop.permute.xlu1 %2386  ;;  %v723_v31 = vpop.permute.xlu0 %722 }
 0x2d2   : > { %v2389_v32 = vunpack.i.h.bf16 %v2387_v30  ;;  %v2388_v33 = vunpack.i.l.bf16 %v2387_v30  ;;  %v734_v34 = vsel %vm726_vm1, %v723_v31, 0  ;;  %2304 = vmatprep.subr.msk.bf16.mxu1 %vm726_vm1, %v723_v31  ;;  %792 = vrot.lane.b32.xlu1 %v715_v29, %s2695_s19 }
 0x2d3   : > { %2229 = vmatpush3.bf16.xpose.msra.mxu1 %v734_v34 }
 0x2d4   : > { %v716_v38 = vpack.c.bf16 %v2389_v32, %v2388_v33 }
 0x2d5   : > { %v2392_v39 = vpop.permute.xlu1 %2391  ;;  %v725_v40 = vpop.permute.xlu0 %724 }
 0x2d6   : > { %v2394_v41 = vunpack.i.h.bf16 %v2392_v39  ;;  %v2393_v42 = vunpack.i.l.bf16 %v2392_v39  ;;  %857 = vrot.lane.b32.xlu0 %v716_v38, %s2695_s19  ;;  %2305 = vmatprep.subr.msk.bf16.mxu1 %vm726_vm1, %v725_v40  ;;  %v737_v46 = vsel %vm726_vm1, %v725_v40, 0 }
 0x2d8   : > { %v718_v44 = vpack.c.bf16 %v2394_v41, %v2393_v42 }
 0x2d9   : > { %v2402_v45 = vpop.permute.xlu1 %2401 }
 0x2da   : > { %v2404_v47 = vunpack.i.h.bf16 %v2402_v45  ;;  %v2403_v48 = vunpack.i.l.bf16 %v2402_v45  ;;  %859 = vrot.lane.b32.xlu0 %v717_v43, %s2695_s19  ;;  %924 = vrot.lane.b32.xlu1 %v718_v44, %s2695_s19 }
 0x2db   : > { %2231 = vmatpush3.bf16.xpose.msra.mxu1 %v737_v46 }
 0x2dc   : > { %v719_v49 = vpack.c.bf16 %v2404_v47, %v2403_v48 }
 0x2de   : > { %2406 = vrot.lane.b32.xlu0 %v2910_v11, %s2693_s15  ;;  %926 = vrot.lane.b32.xlu1 %v719_v49, %s2695_s19  ;;  %s2161_s19 = sshll.u32 %s2790_s25, 9  ;;  %s3320_s25 = scalar_lea.sflag [#allocation4], %s419_s26 }
 0x2e2   : > { %2233 = vmatmul.mubr.msk.bf16.vlgmr.msra.gmra.mrb[8].mxu1 %vm726_vm1, %v713_v18  ;;  %2411 = vrot.lane.b32.xlu1 %v2916_v19, %s2693_s15  ;;  %s2088_s15 = sshll.u32 %s419_s26, 5 }
 0x2e3   : > { %2248 = vmatprep.mubr.msk.bf16.mxu1 %vm726_vm1, %v716_v38 }
 0x2e6   : > { %2416 = vrot.lane.b32.xlu1 %v2910_v11, %s2694_s17 }
 0x2ea   : > { %2421 = vrot.lane.b32.xlu1 %v2910_v11, %s2696_s20  ;;  %v699_v11 = vadd.s32 8, %v2973_v8 }
 0x2ec   : > { %vm705_vm4 = vcmp.ge.s32.totalorder %v699_v11, %v703_v10 }
 0x2ed   : > { %v2986_v24 = vsel %vm705_vm4, 0.0, %v2697_v14 }
 0x33c   : > { %v791_v50 = vpop.permute.xlu1 %790 }
 0x33d   : > { %2306 = vmatprep.subr.msk.bf16.mxu0 %vm726_vm1, %v791_v50  ;;  %v801_v51 = vsel %vm726_vm1, %v791_v50, 0 }
 0x33e   : > { %2237 = vmatpush3.bf16.xpose.msra.mxu0 %v801_v51 }
 0x344   : > { %v793_v52 = vpop.permute.xlu1 %792 }
 0x345   : > { %2307 = vmatprep.subr.msk.bf16.mxu0 %vm726_vm1, %v793_v52  ;;  %v804_v53 = vsel %vm726_vm1, %v793_v52, 0 }
 0x346   : > { %2239 = vmatpush3.bf16.xpose.msra.mxu0 %v804_v53 }
 0x348   : > { %v858_v54 = vpop.permute.xlu0 %857 }
 0x349   : > { %v868_v55 = vsel %vm726_vm1, %v858_v54, 0  ;;  %2308 = vmatprep.subr.msk.bf16.mxu1 %vm726_vm1, %v858_v54 }
 0x34a   : > { %2245 = vmatpush3.bf16.xpose.msra.mxu1 %v868_v55 }
 0x34c   : > { %v860_v56 = vpop.permute.xlu0 %859  ;;  %v925_v57 = vpop.permute.xlu1 %924 }
 0x34d   : > { %v935_v58 = vsel %vm726_vm1, %v925_v57, 0  ;;  %2241 = vmatmul.mubr.msk.bf16.vlgmr.msra.gmra.mrb[0].mxu0 %vm726_vm1, %v715_v29  ;;  %2309 = vmatprep.subr.msk.bf16.mxu1 %vm726_vm1, %v860_v56  ;;  %v871_v60 = vsel %vm726_vm1, %v860_v56, 0 }
 0x34e   : > { %2310 = vmatprep.subr.msk.bf16.mxu0 %vm726_vm1, %v925_v57  ;;  %2256 = vmatprep.mubr.msk.bf16.mxu0 %vm726_vm1, %v718_v44 }
 0x34f   : > { %2253 = vmatpush3.bf16.xpose.msra.mxu0 %v935_v58 }
 0x350   : > { %v927_v59 = vpop.permute.xlu1 %926  ;;  %v2407_v62 = vpop.permute.xlu0 %2406 }
 0x351   : > { %2311 = vmatprep.subr.msk.bf16.mxu0 %vm726_vm1, %v927_v59  ;;  %v938_v63 = vsel %vm726_vm1, %v927_v59, 0  ;;  %v2409_v1 = vunpack.i.h.bf16 %v2407_v62  ;;  %v2408_v2 = vunpack.i.l.bf16 %v2407_v62 }
 0x352   : > { %2247 = vmatpush3.bf16.xpose.msra.mxu1 %v871_v60 }
 0x353   : > { %2260 = vmatprep.subr.bf16.mxu1 %v2912_v12  ;;  %v2968_v6 = vpack.c.bf16 %v2409_v1, %v2408_v2 }
 0x354   : > { %v2962_v61 = vpop.permute.xlu1 %2411 }
 0x357   : > { %2255 = vmatpush3.bf16.xpose.msra.mxu0 %v938_v63 }
 0x358   : > { %v2417_v0 = vpop.permute.xlu1 %2416 }
 0x359   : > { %v2419_v3 = vunpack.i.h.bf16 %v2417_v0  ;;  %v2418_v4 = vunpack.i.l.bf16 %v2417_v0  ;;  %2249 = vmatmul.mubr.msk.bf16.vlgmr.msra.gmra.mrb[12].mxu1 %vm726_vm1, %v717_v43 }
 0x35a   : > { %2261 = vmatpush3.bf16.msra.mxu1 %v2912_v12  ;;  %v701_v12 = vadd.s32 24, %v2973_v8 }
 0x35b   : > { %v1178_v5 = vpack.c.bf16 %v2419_v3, %v2418_v4  ;;  %2262 = vmatprep.subr.bf16.mxu1 %v2918_v20 }
 0x35c   : > { %vm707_vm6 = vcmp.ge.s32.totalorder %v701_v12, %v703_v10 }
 0x35d   : > { %2276 = vmatprep.subr.bf16.mxu0 %v1178_v5  ;;  %v711_v30 = vsel %vm707_vm6, 0.0, %v2697_v14 }
 0x35e   : > { %2257 = vmatmul.mubr.msk.bf16.vlgmr.msra.gmra.mrb[4].mxu0 %vm726_vm1, %v719_v49  ;;  %2263 = vmatpush3.bf16.msra.mxu1 %v2918_v20 }
 0x35f   : > { %2277 = vmatpush3.bf16.msra.mxu0 %v1178_v5  ;;  %2268 = vmatprep.subr.bf16.mxu1 %v2968_v6 }
 0x3b5   : > { %v2234_v13 = vpop.f32.mrb[8].mxu1 }
 0x3b6   : > { %v991_v16 = vmul.f32 0.125, %v2234_v13  ;;  %v773_v17 = vpop.f32.mrb[9].mxu1 }
 0x3b7   : > { %v989_v18 = vmul.f32 0.125, %v773_v17  ;;  %v2235_v20 = vpop.f32.mrb[10].mxu1 }
 0x3b8   : > { %v776_v22 = vpop.f32.mrb[11].mxu1  ;;  %v2984_v23 = vadd.f32 %v991_v16, %v2979_v15  ;;  %v992_v26 = vmul.f32 0.125, %v2235_v20 }
 0x3b9   : > { %v990_v25 = vmul.f32 0.125, %v776_v22  ;;  %v2991_v28 = vadd.f32 %v989_v18, %v2981_v21 }
 0x3ba   : > { %v1028_v27 = vsel %vm1021_vm5, %v2984_v23, -inf  ;;  %v3000_v33 = vadd.f32 %v992_v26, %v711_v30 }
 0x3bb   : > { %1029 = vmax.xlane.f32.xlu0 %v1028_v27  ;;  %v2994_v29 = vadd.f32 %v990_v25, %v2986_v24  ;;  %v1022_v32 = vsel %vm1021_vm5, %v2991_v28, -inf  ;;  %v2422_v27 = vpop.permute.xlu1 %2421 }
 0x3bc   : > { %v1031_v34 = vsel %vm1021_vm5, %v3000_v33, -inf }
 0x3bd   : > { %v1025_v31 = vsel %vm1021_vm5, %v2994_v29, -inf }
 0x3be   : > { %1026 = vmax.xlane.f32.xlu1 %v1025_v31 }
 0x3bf   : > { %1023 = vmax.xlane.f32.xlu0 %v1022_v32 }
 0x3c3   : > { %1032 = vmax.xlane.f32.xlu0 %v1031_v34 }
 0x420   : > { %v2242_v35 = vpop.f32.mrb[0].mxu0 }
 0x421   : > { %v995_v37 = vmul.f32 0.125, %v2242_v35  ;;  %v840_v38 = vpop.f32.mrb[1].mxu0 }
 0x422   : > { %v2243_v39 = vpop.f32.mrb[2].mxu0  ;;  %v993_v47 = vmul.f32 0.125, %v840_v38 }
 0x423   : > { %v996_v40 = vmul.f32 0.125, %v2243_v39  ;;  %v843_v41 = vpop.f32.mrb[3].mxu0  ;;  %v3005_v42 = vadd.f32 %v995_v37, %v2979_v15 }
 0x424   : > { %v994_v51 = vmul.f32 0.125, %v843_v41  ;;  %v3021_v59 = vadd.f32 %v993_v47, %v2981_v21 }
 0x425   : > { %v1040_v43 = vsel %vm1021_vm5, %v3005_v42, -inf  ;;  %v3009_v44 = vadd.f32 %v996_v40, %v711_v30 }
 0x426   : > { %1041 = vmax.xlane.f32.xlu0 %v1040_v43  ;;  %v3026_v1 = vadd.f32 %v994_v51, %v2986_v24  ;;  %v1034_v4 = vsel %vm1021_vm5, %v3021_v59, -inf }
 0x427   : > { %v1043_v45 = vsel %vm1021_vm5, %v3009_v44, -inf }
 0x428   : > { %1044 = vmax.xlane.f32.xlu1 %v1043_v45  ;;  %v1037_v9 = vsel %vm1021_vm5, %v3026_v1, -inf  ;;  %v2413_v45 = vunpack.i.l.bf16 %v2962_v61 }
 0x42c   : > { %v2250_v46 = vpop.f32.mrb[12].mxu1 }
 0x42d   : > { %v999_v48 = vmul.f32 0.125, %v2250_v46  ;;  %v907_v49 = vpop.f32.mrb[13].mxu1 }
 0x42e   : > { %v2251_v50 = vpop.f32.mrb[14].mxu1  ;;  %v997_v55 = vmul.f32 0.125, %v907_v49  ;;  %v2423_v49 = vunpack.i.l.bf16 %v2422_v27 }
 0x42f   : > { %v1000_v52 = vmul.f32 0.125, %v2251_v50  ;;  %v910_v53 = vpop.f32.mrb[15].mxu1  ;;  %v3014_v54 = vadd.f32 %v999_v48, %v2979_v15  ;;  %v2424_v48 = vunpack.i.h.bf16 %v2422_v27 }
 0x430   : > { %v998_v62 = vmul.f32 0.125, %v910_v53  ;;  %v3031_v5 = vadd.f32 %v997_v55, %v2981_v21 }
 0x431   : > { %v2258_v56 = vpop.f32.mrb[4].mxu0  ;;  %v1052_v57 = vsel %vm1021_vm5, %v3014_v54, -inf  ;;  %v3018_v58 = vadd.f32 %v1000_v52, %v711_v30  ;;  %v3086_v50 = vpack.c.bf16 %v2424_v48, %v2423_v49 }
 0x432   : > { %v974_v60 = vpop.f32.mrb[5].mxu0  ;;  %1053 = vmax.xlane.f32.xlu0 %v1052_v57  ;;  %v1003_v3 = vmul.f32 0.125, %v2258_v56  ;;  %v3036_v10 = vadd.f32 %v998_v62, %v2986_v24  ;;  %v1046_v12 = vsel %vm1021_vm5, %v3031_v5, -inf }
 0x433   : > { %v2259_v63 = vpop.f32.mrb[6].mxu0  ;;  %v1055_v0 = vsel %vm1021_vm5, %v3018_v58, -inf  ;;  %v1001_v11 = vmul.f32 0.125, %v974_v60 }
 0x434   : > { %v977_v2 = vpop.f32.mrb[7].mxu0  ;;  %1056 = vmax.xlane.f32.xlu1 %v1055_v0  ;;  %v1004_v7 = vmul.f32 0.125, %v2259_v63  ;;  %v3041_v13 = vadd.f32 %v1003_v3, %v2979_v15  ;;  %v1049_v16 = vsel %vm1021_vm5, %v3036_v10, -inf }
 0x435   : > { %v1002_v14 = vmul.f32 0.125, %v977_v2  ;;  %v3050_v20 = vadd.f32 %v1001_v11, %v2981_v21 }
 0x436   : > { %1035 = vmax.xlane.f32.xlu0 %v1034_v4  ;;  %v3045_v17 = vadd.f32 %v1004_v7, %v711_v30  ;;  %v1064_v18 = vsel %vm1021_vm5, %v3041_v13, -inf }
 0x437   : > { %v3055_v15 = vadd.f32 %v1002_v14, %v2986_v24  ;;  %v1058_v25 = vsel %vm1021_vm5, %v3050_v20, -inf }
 0x438   : > { %1038 = vmax.xlane.f32.xlu1 %v1037_v9  ;;  %v1067_v22 = vsel %vm1021_vm5, %v3045_v17, -inf }
 0x439   : > { %v1061_v26 = vsel %vm1021_vm5, %v3055_v15, -inf }
 0x43a   : > { %1047 = vmax.xlane.f32.xlu0 %v1046_v12 }
 0x43c   : > { %1050 = vmax.xlane.f32.xlu1 %v1049_v16 }
 0x43e   : > { %1065 = vmax.xlane.f32.xlu0 %v1064_v18 }
 0x440   : > { %1068 = vmax.xlane.f32.xlu1 %v1067_v22 }
 0x442   : > { %1059 = vmax.xlane.f32.xlu0 %v1058_v25 }
 0x444   : > { %1062 = vmax.xlane.f32.xlu1 %v1061_v26 }
 0x448   : > { %v1030_v30 = vpop.xlane.xlu0 %1029 }
 0x449   : > { %v1072_v31 = vsub.f32 %v2984_v23, %v1030_v30 }
 0x44b   : > { %v1027_v21 = vpop.xlane.xlu1 %1026  ;;  %v1090_v38 = vmul.f32 1.442695, %v1072_v31 }
 0x44c   : > { %v1071_v32 = vsub.f32 %v2994_v29, %v1027_v21  ;;  %v1024_v34 = vpop.xlane.xlu0 %1023 }
 0x44d   : > { %v1070_v24 = vsub.f32 %v2991_v28, %v1024_v34 }
 0x44e   : > { %v1088_v35 = vmul.f32 1.442695, %v1071_v32 }
 0x44f   : > { %v1086_v37 = vmul.f32 1.442695, %v1070_v24 }
 0x450   : > { %2517 = vpow2.f32 %v1088_v35  ;;  %v1033_v39 = vpop.xlane.xlu0 %1032 }
 0x451   : > { %2519 = vpow2.f32 %v1086_v37  ;;  %v1073_v40 = vsub.f32 %v3000_v33, %v1033_v39  ;;  %v2414_v33 = vunpack.i.h.bf16 %v2962_v61 }
 0x452   : > { %2521 = vpow2.f32 %v1090_v38 }
 0x453   : > { %v1092_v41 = vmul.f32 1.442695, %v1073_v40  ;;  %v1177_v47 = vpack.c.bf16 %v2414_v33, %v2413_v45 }
 0x455   : > { %2523 = vpow2.f32 %v1092_v41  ;;  %2431 = vrot.lane.b32.xlu1 %v2916_v19, %s2696_s20 }
 0x458   : > { %2426 = vrot.lane.b32.xlu0 %v2916_v19, %s2694_s17  ;;  %s421_s17 = scalar_lea.vmem [#allocation5], %s2088_s15 }
 0x459   : > { %s2008_s20 = sshll.u32 %s421_s17, 4  ;;  %s3313_s20 = int_to_ptr.vmem [resolvable:$true] %s2008_s20 }
 0x45a   : > { %v3069_v23 = vpop.eup %2517  ;;  %s2621_s30 = scalar_lea.vmem %s3313_s20, 512 }
 0x45b   : > { %v3071_v28 = vpop.eup %2519  ;;  %p2622_p6 = scmp.ne.s32.totalorder %s3313_s20, %s2621_s30 }
 0x45c   : > { %v1166_v29 = vpack.c.bf16 %v3069_v23, %v3071_v28  ;;  %v3075_v43 = vpop.eup %2521 }
 0x45d   : > { %p2623_p10 = pnand %p2622_p6, %p3387_p9 }
 0x45e   : > { %2264 = vmatprep.mubr.msk.bf16.mxu1 %vm1021_vm5, %v1166_v29 }
 0x45f   : > { %v3080_v46 = vpop.eup %2523  ;;  %p2624_p12 = pneg %p2623_p10 }
 0x460   : > { %v1167_v19 = vpack.c.bf16 %v3080_v46, %v3075_v43 }
 0x462   : > { %2265 = vmatmul.mubr.msk.bf16.vlgmr.msra.gmra.mrb[16].mxu1 %vm1021_vm5, %v1167_v19 }
 0x463   : > { %2269 = vmatpush3.bf16.msra.mxu1 %v2968_v6 }
 0x464   : > { %2270 = vmatprep.subr.bf16.mxu1 %v1177_v47 }
 0x467   : > { %2271 = vmatpush3.bf16.msra.mxu1 %v1177_v47 }
 0x468   : > { %2284 = vmatprep.subr.bf16.mxu1 %v3086_v50 }
 0x4b3   : > { %v1042_v61 = vpop.xlane.xlu0 %1041 }
 0x4b4   : > { %v1076_v51 = vsub.f32 %v3005_v42, %v1042_v61 }
 0x4b5   : > { %v1045_v53 = vpop.xlane.xlu1 %1044 }
 0x4b6   : > { %v1098_v52 = vmul.f32 1.442695, %v1076_v51  ;;  %v1077_v55 = vsub.f32 %v3009_v44, %v1045_v53 }
 0x4b8   : > { %2525 = vpow2.f32 %v1098_v52  ;;  %v1100_v0 = vmul.f32 1.442695, %v1077_v55 }
 0x4bf   : > { %v1054_v56 = vpop.xlane.xlu0 %1053 }
 0x4c0   : > { %v1080_v57 = vsub.f32 %v3014_v54, %v1054_v56 }
 0x4c1   : > { %v1057_v60 = vpop.xlane.xlu1 %1056 }
 0x4c2   : > { %v3092_v62 = vpop.eup %2525  ;;  %v1106_v6 = vmul.f32 1.442695, %v1080_v57  ;;  %v1081_v63 = vsub.f32 %v3018_v58, %v1057_v60 }
 0x4c3   : > { %v1036_v2 = vpop.xlane.xlu0 %1035  ;;  %v1136_v3 = vsel %vm1021_vm5, %v3092_v62, 0.0 }
 0x4c4   : > { %2527 = vpow2.f32 %v1106_v6  ;;  %v1108_v42 = vmul.f32 1.442695, %v1081_v63  ;;  %v1074_v4 = vsub.f32 %v3021_v59, %v1036_v2  ;;  %1137 = vadd.xlane.f32.xlu0 %v1136_v3 }
 0x4c5   : > { %v1039_v44 = vpop.xlane.xlu1 %1038 }
 0x4c6   : > { %2529 = vpow2.f32 %v1108_v42  ;;  %v1094_v7 = vmul.f32 1.442695, %v1074_v4  ;;  %v1075_v54 = vsub.f32 %v3026_v1, %v1039_v44  ;;  %v1118_v44 = vsel %vm1021_vm5, %v3071_v28, 0.0 }
 0x4c7   : > { %2531 = vpow2.f32 %v1100_v0  ;;  %v1048_v9 = vpop.xlane.xlu0 %1047 }
 0x4c8   : > { %2533 = vpow2.f32 %v1094_v7  ;;  %v1096_v11 = vmul.f32 1.442695, %v1075_v54  ;;  %v1078_v58 = vsub.f32 %v3031_v5, %v1048_v9  ;;  %v1121_v7 = vsel %vm1021_vm5, %v3069_v23, 0.0 }
 0x4c9   : > { %v1051_v12 = vpop.xlane.xlu1 %1050  ;;  %v1124_v54 = vsel %vm1021_vm5, %v3075_v43, 0.0  ;;  %v1127_v9 = vsel %vm1021_vm5, %v3080_v46, 0.0 }
 0x4ca   : > { %2535 = vpow2.f32 %v1096_v11  ;;  %v1102_v14 = vmul.f32 1.442695, %v1078_v58  ;;  %v1079_v16 = vsub.f32 %v3036_v10, %v1051_v12 }
 0x4cb   : > { %v1066_v18 = vpop.xlane.xlu0 %1065 }
 0x4cc   : > { %2537 = vpow2.f32 %v1102_v14  ;;  %v1104_v59 = vmul.f32 1.442695, %v1079_v16  ;;  %v1084_v22 = vsub.f32 %v3041_v13, %v1066_v18 }
 0x4cd   : > { %v1069_v25 = vpop.xlane.xlu1 %1068 }
 0x4ce   : > { %v2528_v26 = vpop.eup %2527  ;;  %2539 = vpow2.f32 %v1104_v59  ;;  %v1085_v1 = vsub.f32 %v3045_v17, %v1069_v25  ;;  %v1114_v27 = vmul.f32 1.442695, %v1084_v22 }
 0x4cf   : > { %v1060_v30 = vpop.xlane.xlu0 %1059  ;;  %v1148_v21 = vsel %vm1021_vm5, %v2528_v26, 0.0 }
 0x4d0   : > { %v2530_v5 = vpop.eup %2529  ;;  %v1082_v31 = vsub.f32 %v3050_v20, %v1060_v30  ;;  %1149 = vadd.xlane.f32.xlu0 %v1148_v21  ;;  %v1116_v10 = vmul.f32 1.442695, %v1085_v1  ;;  %2541 = vpow2.f32 %v1114_v27  ;;  %v2477_v1 = vld [vmem:[#allocation2] sm:$0xff]  }
 0x4d1   : > { %v2532_v32 = vpop.eup %2531  ;;  %v1063_v34 = vpop.xlane.xlu1 %1062  ;;  %v1151_v24 = vsel %vm1021_vm5, %v2530_v5, 0.0  ;;  %v1171_v57 = vpack.c.bf16 %v2530_v5, %v2528_v26  ;;  %v2478_v5 = vld [vmem:[#allocation2 + $0x8] sm:$0xff]  }
 0x4d2   : > { %v2534_v35 = vpop.eup %2533  ;;  %v1110_v13 = vmul.f32 1.442695, %v1082_v31  ;;  %v1083_v37 = vsub.f32 %v3055_v15, %v1063_v34  ;;  %1152 = vadd.xlane.f32.xlu1 %v1151_v24  ;;  %v1169_v19 = vpack.c.bf16 %v2532_v32, %v3092_v62  ;;  %v1139_v56 = vsel %vm1021_vm5, %v2532_v32, 0.0 }
 0x4d3   : > { %v2427_v17 = vpop.permute.xlu0 %2426  ;;  %v1130_v38 = vsel %vm1021_vm5, %v2534_v35, 0.0 }
 0x4d4   : > { %v2536_v39 = vpop.eup %2535  ;;  %2543 = vpow2.f32 %v1110_v13  ;;  %v1112_v40 = vmul.f32 1.442695, %v1083_v37  ;;  %v2429_v41 = vunpack.i.h.bf16 %v2427_v17  ;;  %v2428_v20 = vunpack.i.l.bf16 %v2427_v17  ;;  %1131 = vadd.xlane.f32.xlu0 %v1130_v38 }
 0x4d5   : > { %2545 = vpow2.f32 %v1116_v10  ;;  %v2432_v29 = vpop.permute.xlu1 %2431  ;;  %v1133_v33 = vsel %vm1021_vm5, %v2536_v39, 0.0  ;;  %v1168_v45 = vpack.c.bf16 %v2536_v39, %v2534_v35 }
 0x4d6   : > { %v2538_v47 = vpop.eup %2537  ;;  %2547 = vpow2.f32 %v1112_v40  ;;  %v1179_v15 = vpack.c.bf16 %v2429_v41, %v2428_v20  ;;  %v2434_v48 = vunpack.i.h.bf16 %v2432_v29  ;;  %v2433_v49 = vunpack.i.l.bf16 %v2432_v29  ;;  %1134 = vadd.xlane.f32.xlu1 %v1133_v33  ;;  %v2479_v40 = vld [vmem:[#allocation2 + $0x10] sm:$0xff]  }
 0x4d7   : > { %2272 = vmatprep.mubr.msk.bf16.mxu1 %vm1021_vm5, %v1168_v45  ;;  %v1142_v61 = vsel %vm1021_vm5, %v2538_v47, 0.0 }
 0x4d8   : > { %v2540_v51 = vpop.eup %2539  ;;  %v1181_v52 = vpack.c.bf16 %v2434_v48, %v2433_v49  ;;  %2273 = vmatmul.mubr.msk.bf16.vlgmr.msra.gmra.mrb[20].mxu1 %vm1021_vm5, %v1169_v19  ;;  %1143 = vadd.xlane.f32.xlu0 %v1142_v61 }
 0x4d9   : > { %2285 = vmatpush3.bf16.msra.mxu1 %v3086_v50  ;;  %2278 = vmatprep.subr.bf16.mxu0 %v1179_v15  ;;  %v1145_v53 = vsel %vm1021_vm5, %v2540_v51, 0.0  ;;  %v1170_v55 = vpack.c.bf16 %v2540_v51, %v2538_v47 }
 0x4da   : > { %2279 = vmatpush3.bf16.msra.mxu0 %v1179_v15  ;;  %1146 = vadd.xlane.f32.xlu1 %v1145_v53  ;;  %v2542_v60 = vpop.eup %2541 }
 0x4db   : > { %2286 = vmatprep.subr.bf16.mxu1 %v1181_v52  ;;  %2280 = vmatprep.mubr.msk.bf16.mxu0 %vm1021_vm5, %v1170_v55  ;;  %v1160_v42 = vsel %vm1021_vm5, %v2542_v60, 0.0 }
 0x4dc   : > { %1140 = vadd.xlane.f32.xlu0 %v1139_v56  ;;  %2292 = vmatprep.subr.bf16.mxu0 %v2477_v1 }
 0x4dd   : > { %2281 = vmatmul.mubr.msk.bf16.vlgmr.msra.gmra.mrb[8].mxu0 %vm1021_vm5, %v1171_v57  ;;  %2287 = vmatpush3.bf16.msra.mxu1 %v1181_v52  ;;  %v2480_v52 = vld [vmem:[#allocation2 + $0x18] sm:$0xff]  }
 0x4de   : > { %v2544_v62 = vpop.eup %2543  ;;  %2293 = vmatpush3.bf16.msra.mxu0 %v2477_v1 }
 0x4df   : > { %v2546_v6 = vpop.eup %2545  ;;  %v1154_v50 = vsel %vm1021_vm5, %v2544_v62, 0.0  ;;  %2294 = vmatprep.subr.bf16.mxu0 %v2478_v5 }
 0x4e0   : > { %v2548_v63 = vpop.eup %2547  ;;  %1155 = vadd.xlane.f32.xlu0 %v1154_v50  ;;  %v1173_v3 = vpack.c.bf16 %v2546_v6, %v2542_v60  ;;  %v1163_v4 = vsel %vm1021_vm5, %v2546_v6, 0.0 }
 0x4e1   : > { %v1157_v0 = vsel %vm1021_vm5, %v2548_v63, 0.0  ;;  %v1172_v2 = vpack.c.bf16 %v2548_v63, %v2544_v62 }
 0x4e2   : > { %1158 = vadd.xlane.f32.xlu1 %v1157_v0  ;;  %2295 = vmatpush3.bf16.msra.mxu0 %v2478_v5 }
 0x4e3   : > { %2288 = vmatprep.mubr.msk.bf16.mxu1 %vm1021_vm5, %v1172_v2  ;;  %2296 = vmatprep.subr.bf16.mxu0 %v2479_v40 }
 0x4e4   : > { %1161 = vadd.xlane.f32.xlu0 %v1160_v42  ;;  %2289 = vmatmul.mubr.msk.bf16.vlgmr.msra.gmra.mrb[24].mxu1 %vm1021_vm5, %v1173_v3 }
 0x4e5   : > { %1769 = vmatprep.mubr.bf16.mxu1 %v2692_v36 }
 0x4e6   : > { %1164 = vadd.xlane.f32.xlu1 %v1163_v4  ;;  %2297 = vmatpush3.bf16.msra.mxu0 %v2479_v40 }
 0x4e7   : > { %2298 = vmatprep.subr.bf16.mxu0 %v2480_v52 }
 0x4e8   : > { %1119 = vadd.xlane.f32.xlu0 %v1118_v44 }
 0x4ea   : > { %1122 = vadd.xlane.f32.xlu1 %v1121_v7  ;;  %2299 = vmatpush3.bf16.msra.mxu0 %v2480_v52 }
 0x4ec   : > { %1125 = vadd.xlane.f32.xlu0 %v1124_v54 }
 0x4ee   : > { %1128 = vadd.xlane.f32.xlu1 %v1127_v9 }
 0x535   : > { %v3133_v11 = vpop.f32.mrb[16].mxu1 }
 0x536   : > { %v3135_v58 = vpop.f32.mrb[17].mxu1 }
 0x537   : > { %v3137_v12 = vpop.f32.mrb[18].mxu1 }
 0x538   : > { %v3139_v28 = vpop.f32.mrb[19].mxu1 }
 0x551   : > { %v1138_v14 = vpop.xlane.xlu0 %1137 }
 0x552   : > { %2549 = vrcp.f32 %v1138_v14 }
 0x55c   : > { %v2550_v27 = vpop.eup %2549 }
 0x55d   : > { %v1150_v16 = vpop.xlane.xlu0 %1149 }
 0x55f   : > { %v1153_v18 = vpop.xlane.xlu1 %1152 }
 0x561   : > { %v1132_v23 = vpop.xlane.xlu0 %1131 }
 0x562   : > { %2551 = vrcp.f32 %v1132_v23 }
 0x563   : > { %v1135_v22 = vpop.xlane.xlu1 %1134 }
 0x565   : > { %v1144_v59 = vpop.xlane.xlu0 %1143 }
 0x567   : > { %v1147_v25 = vpop.xlane.xlu1 %1146 }
 0x569   : > { %v1141_v43 = vpop.xlane.xlu0 %1140 }
 0x56a   : > { %2553 = vrcp.f32 %v1141_v43 }
 0x56b   : > { %2555 = vrcp.f32 %v1135_v22 }
 0x56c   : > { %2557 = vrcp.f32 %v1150_v16  ;;  %v2552_v31 = vpop.eup %2551 }
 0x56d   : > { %v1156_v46 = vpop.xlane.xlu0 %1155  ;;  %2559 = vrcp.f32 %v1153_v18 }
 0x56e   : > { %2561 = vrcp.f32 %v1144_v59 }
 0x56f   : > { %v1159_v26 = vpop.xlane.xlu1 %1158  ;;  %2563 = vrcp.f32 %v1147_v25 }
 0x570   : > { %2565 = vrcp.f32 %v1156_v46 }
 0x571   : > { %v1162_v30 = vpop.xlane.xlu0 %1161 }
 0x572   : > { %2567 = vrcp.f32 %v1162_v30 }
 0x573   : > { %v1165_v32 = vpop.xlane.xlu1 %1164 }
 0x574   : > { %v2554_v34 = vpop.eup %2553  ;;  %2569 = vrcp.f32 %v1165_v32 }
 0x575   : > { %v2556_v35 = vpop.eup %2555  ;;  %2571 = vrcp.f32 %v1159_v26  ;;  %v1120_v14 = vpop.xlane.xlu0 %1119 }
 0x576   : > { %v2558_v41 = vpop.eup %2557  ;;  %2573 = vrcp.f32 %v1120_v14 }
 0x577   : > { %v2560_v33 = vpop.eup %2559  ;;  %v1123_v16 = vpop.xlane.xlu1 %1122 }
 0x578   : > { %v2562_v47 = vpop.eup %2561  ;;  %2575 = vrcp.f32 %v1123_v16 }
 0x579   : > { %v2564_v48 = vpop.eup %2563  ;;  %v1126_v23 = vpop.xlane.xlu0 %1125 }
 0x57a   : > { %v2566_v60 = vpop.eup %2565  ;;  %2577 = vrcp.f32 %v1126_v23 }
 0x57b   : > { %v1129_v18 = vpop.xlane.xlu1 %1128 }
 0x57c   : > { %v2568_v6 = vpop.eup %2567  ;;  %2579 = vrcp.f32 %v1129_v18 }
 0x57e   : > { %v2570_v63 = vpop.eup %2569 }
 0x57f   : > { %v2572_v2 = vpop.eup %2571 }
 0x580   : > { %v2574_v22 = vpop.eup %2573 }
 0x582   : > { %v2576_v43 = vpop.eup %2575 }
 0x584   : > { %v2578_v46 = vpop.eup %2577 }
 0x585   : > { %v1420_v32 = vmul.f32 %v2578_v46, %v3133_v11 }
 0x586   : > { %v2580_v1 = vpop.eup %2579 }
 0x5ab   : > { %v2274_v21 = vpop.f32.mrb[20].mxu1 }
 0x5ac   : > { %v1277_v10 = vpop.f32.mrb[21].mxu1  ;;  %v1424_v13 = vmul.f32 %v2550_v27, %v2274_v21 }
 0x5ad   : > { %v2275_v24 = vpop.f32.mrb[22].mxu1  ;;  %v1422_v38 = vmul.f32 %v2552_v31, %v1277_v10  ;;  %v1421_v10 = vmul.f32 %v2580_v1, %v3137_v12 }
 0x5ae   : > { %v1425_v37 = vmul.f32 %v2554_v34, %v2275_v24  ;;  %v1280_v17 = vpop.f32.mrb[23].mxu1  ;;  %v1418_v34 = vmul.f32 %v2574_v22, %v3135_v58  ;;  %v1419_v24 = vmul.f32 %v2576_v43, %v3139_v28 }
 0x5af   : > { %v1423_v39 = vmul.f32 %v2556_v35, %v1280_v17 }
 0x5b0   : > { %v2435_v20 = vpack.i.bf16 %v1425_v37, %v1424_v13  ;;  %v2282_v29 = vpop.f32.mrb[8].mxu0 }
 0x5b1   : > { %v2445_v45 = vpack.i.bf16 %v1423_v39, %v1422_v38  ;;  %v1332_v19 = vpop.f32.mrb[9].mxu0  ;;  %v1428_v49 = vmul.f32 %v2558_v41, %v2282_v29 }
 0x5b2   : > { %v2283_v15 = vpop.f32.mrb[10].mxu0  ;;  %2436 = vrot.lane.b32.xlu1 %v2435_v20, %s2698_s28  ;;  %v1426_v53 = vmul.f32 %v2562_v47, %v1332_v19 }
 0x5b3   : > { %v1429_v61 = vmul.f32 %v2560_v33, %v2283_v15  ;;  %v1335_v51 = vpop.f32.mrb[11].mxu0  ;;  %2446 = vrot.lane.b32.xlu0 %v2445_v45, %s2698_s28 }
 0x5b4   : > { %v1427_v55 = vmul.f32 %v2564_v48, %v1335_v51 }
 0x5b5   : > { %v2440_v56 = vpack.i.bf16 %v1429_v61, %v1428_v49 }
 0x5b6   : > { %v2450_v57 = vpack.i.bf16 %v1427_v55, %v1426_v53  ;;  %v2119_v53 = vld [vmem:[%s3366_s5] ss:$0 sm:$0xff] }
 0x5b7   : > { %2441 = vrot.lane.b32.xlu1 %v2440_v56, %s2699_s29  ;;  %v2290_v62 = vpop.f32.mrb[24].mxu1 }
 0x5b8   : > { %v1387_v50 = vpop.f32.mrb[25].mxu1  ;;  %v1432_v3 = vmul.f32 %v2568_v6, %v2290_v62 }
 0x5b9   : > { %v2291_v0 = vpop.f32.mrb[26].mxu1  ;;  %v1430_v44 = vmul.f32 %v2566_v60, %v1387_v50  ;;  %v2589_v50 = vld [vmem:[%s2857_s16] sm:$0xff] }
 0x5ba   : > { %v1433_v42 = vmul.f32 %v2570_v63, %v2291_v0  ;;  %v1390_v4 = vpop.f32.mrb[27].mxu1 }
 0x5bb   : > { %2451 = vrot.lane.b32.xlu1 %v2450_v57, %s2699_s29  ;;  %v1431_v7 = vmul.f32 %v2572_v2, %v1390_v4  ;;  %v2590_v2 = vld [vmem:[%s2857_s16 + $0x10] sm:$0xff]  ;;  %v2591_v4 = vld [vmem:[%s2857_s16 + $0x8] sm:$0xff] }
 0x5bc   : > { %v2460_v54 = vpack.i.bf16 %v1433_v42, %v1432_v3 }
 0x5bd   : > { %v2455_v9 = vpack.i.bf16 %v1431_v7, %v1430_v44 }
 0x5bf   : > { %2461 = vrot.lane.b32.xlu1 %v2460_v54, %s2700_s23  ;;  %2456 = vrot.lane.b32.xlu0 %v2455_v9, %s2700_s23  ;;  %v2592_v9 = vld [vmem:[%s2857_s16 + $0x18] sm:$0xff]  ;;  %s3311_s23 = scalar_lea.hbm %s3373_s12, %s2161_s19  ;;  %s2701_s16 = smov [#allocation5]  }
 0x5c0   : > { %s2625_s18 = sshll.u32 %s2701_s16, 4  ;;  %s2626_s18 = int_to_ptr.vmem [resolvable:$false] %s2625_s18 }
 0x5c1   : > { %s2627_s15 = scalar_lea.vmem %s2626_s18, 1024  ;;  %p2628_p2 = scmp.lt.s32.totalorder %s3313_s20, %s2626_s18 }
 0x5c2   : > { %p2629_p3 = scmp.lt.s32.totalorder %s2627_s15, %s2621_s30 }
 0x5c4   : > { %p2630_p4 = por %p2629_p3, %p2628_p2 }
 0x5c6   : > { %p2631_p7 = pnand %p2630_p4, %p2624_p12 }
 0x624   : > { %v2437_v59 = vpop.permute.xlu1 %2436 }
 0x625   : > { %v2447_v26 = vpop.permute.xlu0 %2446  ;;  %v2439_v27 = vunpack.i.h.bf16 %v2437_v59  ;;  %v2438_v30 = vunpack.i.l.bf16 %v2437_v59 }
 0x626   : > { %v2449_v21 = vunpack.i.h.bf16 %v2447_v26  ;;  %v2448_v5 = vunpack.i.l.bf16 %v2447_v26 }
 0x627   : > { %v1485_v38 = vsel %vm726_vm1, %v1421_v10, %v2439_v27  ;;  %v1484_v39 = vsel %vm726_vm1, %v1420_v32, %v2438_v30 }
 0x628   : > { %v1482_v40 = vsel %vm726_vm1, %v1418_v34, %v2448_v5  ;;  %v1483_v41 = vsel %vm726_vm1, %v1419_v24, %v2449_v21 }
 0x629   : > { %v2442_v25 = vpop.permute.xlu1 %2441 }
 0x62a   : > { %v2444_v35 = vunpack.i.h.bf16 %v2442_v25  ;;  %v2443_v13 = vunpack.i.l.bf16 %v2442_v25 }
 0x62c   : > { %v1488_v28 = vsel %vm1021_vm5, %v1484_v39, %v2443_v13  ;;  %v1489_v45 = vsel %vm1021_vm5, %v1485_v38, %v2444_v35  ;;  %v2481_v38 = vld [vmem:[%s3369_s8] ss:$8 sps:$4 sm:$0xff]   ;;  %v2486_v39 = vld [vmem:[%s3369_s8 + $0x14] ss:$8 sps:$4 sm:$0xff]  }
 0x62d   : > { %v2452_v31 = vpop.permute.xlu1 %2451 }
 0x62e   : > { %v2454_v37 = vunpack.i.h.bf16 %v2452_v31  ;;  %v2453_v17 = vunpack.i.l.bf16 %v2452_v31 }
 0x630   : > { %v1487_v19 = vsel %vm1021_vm5, %v1483_v41, %v2454_v37  ;;  %v1486_v47 = vsel %vm1021_vm5, %v1482_v40, %v2453_v17  ;;  %v2483_v17 = vld [vmem:[%s3369_s8 + $0x4] ss:$8 sps:$4 sm:$0xff]   ;;  %v2484_v40 = vld [vmem:[%s3369_s8 + $0x10] ss:$8 sps:$4 sm:$0xff]  }
 0x631   : > { %v2462_v11 = vpop.permute.xlu1 %2461  ;;  %v2457_v20 = vpop.permute.xlu0 %2456  ;;  %1737 = vmatprep.subr.bf16.mxu1 %v2483_v17  ;;  %v2489_v41 = vld [vmem:[%s3369_s8 + $0x24] ss:$8 sps:$4 sm:$0xff]  }
 0x632   : > { %v2464_v12 = vunpack.i.h.bf16 %v2462_v11  ;;  %v2463_v29 = vunpack.i.l.bf16 %v2462_v11  ;;  %v2459_v58 = vunpack.i.h.bf16 %v2457_v20  ;;  %v2458_v33 = vunpack.i.l.bf16 %v2457_v20  ;;  %1738 = vmatpush1.bf16.msra.mxu1 %v2481_v38  ;;  %v2487_v11 = vld [vmem:[%s3369_s8 + $0x20] ss:$8 sps:$4 sm:$0xff]   ;;  %v2492_v20 = vld [vmem:[%s3369_s8 + $0x34] ss:$8 sps:$4 sm:$0xff]  }
 0x633   : > { %1739 = vmatprep.subr.bf16.mxu1 %v2486_v39 }
 0x634   : > { %v1494_v15 = vsel %vm1490_vm7, %v1489_v45, %v2464_v12  ;;  %v1493_v48 = vsel %vm1490_vm7, %v1488_v28, %v2463_v29  ;;  %v1492_v49 = vsel %vm1490_vm7, %v1487_v19, %v2459_v58  ;;  %v1491_v61 = vsel %vm1490_vm7, %v1486_v47, %v2458_v33  ;;  %v2490_v12 = vld [vmem:[%s3369_s8 + $0x30] ss:$8 sps:$4 sm:$0xff]   ;;  %v2493_v29 = vld [vmem:[%s3371_s10 + $0x40] sm:$0xff]   ;;  %v2495_v33 = vld [vmem:[%s3371_s10 + $0x48] sm:$0xff]  }
 0x635   : > { %v1496_v51 = vpack.c.bf16 %v1494_v15, %v1493_v48  ;;  %v1495_v52 = vpack.c.bf16 %v1492_v49, %v1491_v61  ;;  %v2494_v58 = vld [vmem:[%s3371_s10] sm:$0xff]   ;;  %2200 = vmatprep.subr.bf16.mxu0 %v2493_v29  ;;  %v2496_v28 = vld [vmem:[%s3371_s10 + $0x8] sm:$0xff]   ;;  %v2497_v45 = vld [vmem:[%s3371_s10 + $0x50] sm:$0xff]  }
 0x636   : > { %1740 = vmatpush1.bf16.msra.mxu1 %v2484_v40  ;;  %v2498_v19 = vld [vmem:[%s3371_s10 + $0x10] sm:$0xff]   ;;  %v2499_v47 = vld [vmem:[%s3371_s10 + $0x58] sm:$0xff]   ;;  %v2501_v48 = vld [vmem:[%s3371_s10 + $0x60] sm:$0xff]  }
 0x637   : > { %2300 = vmatprep.mubr.msk.bf16.mxu0 %vm434_vm0, %v1495_v52  ;;  %1741 = vmatprep.subr.bf16.mxu1 %v2489_v41  ;;  %v2500_v15 = vld [vmem:[%s3371_s10 + $0x18] sm:$0xff]   ;;  %v2502_v49 = vld [vmem:[%s3371_s10 + $0x20] sm:$0xff]   ;;  %v2503_v61 = vld [vmem:[%s3371_s10 + $0x68] sm:$0xff]  }
 0x638   : > { %2301 = vmatmul.mubr.msk.bf16.vlgmr.msra.gmra.mrb[12].mxu0 %vm434_vm0, %v1496_v51 }
 0x639   : > { %2201 = vmatpush3.bf16.msra.mxu0 %v2494_v58 }
 0x63a   : > { %1742 = vmatpush1.bf16.msra.mxu1 %v2487_v11  ;;  %2202 = vmatprep.subr.bf16.mxu0 %v2495_v33 }
 0x63b   : > { %1743 = vmatprep.subr.bf16.mxu1 %v2492_v20 }
 0x63d   : > { %2203 = vmatpush3.bf16.msra.mxu0 %v2496_v28 }
 0x63e   : > { %1744 = vmatpush1.bf16.msra.mxu1 %v2490_v12  ;;  %2204 = vmatprep.subr.bf16.mxu0 %v2497_v45 }
 0x641   : > { %2205 = vmatpush3.bf16.msra.mxu0 %v2498_v19 }
 0x642   : > { %2206 = vmatprep.subr.bf16.mxu0 %v2499_v47 }
 0x645   : > { %2207 = vmatpush3.bf16.msra.mxu0 %v2500_v15 }
 0x646   : > { %2208 = vmatprep.subr.bf16.mxu0 %v2501_v48 }
 0x649   : > { %2209 = vmatpush3.bf16.msra.mxu0 %v2502_v49 }
 0x64a   : > { %2210 = vmatprep.subr.bf16.mxu0 %v2503_v61 }
 0x70b   : > { %v2302_v55 = vpop.f32.mrb[12].mxu0 }
 0x70c   : > { %v1576_v56 = vpop.f32.mrb[13].mxu0  ;;  %v1585_v57 = vadd.f32 %v2302_v55, %v2119_v53 }
 0x70d   : > { %v1577_v60 = vadd.f32 %v2119_v53, %v1576_v56  ;;  %v2303_v62 = vpop.f32.mrb[14].mxu0 }
 0x70e   : > { %v1579_v6 = vpop.f32.mrb[15].mxu0  ;;  %v3166_v3 = vadd.f32 %v2590_v2, %v1585_v57  ;;  %v1588_v42 = vadd.f32 %v2303_v62, %v2119_v53 }
 0x70f   : > { %v3163_v63 = vadd.f32 %v2589_v50, %v1577_v60  ;;  %v1580_v0 = vadd.f32 %v2119_v53, %v1579_v6 }
 0x710   : > { %v3176_v14 = vadd.f32 %v2592_v9, %v1588_v42  ;;  %v1603_v16 = vsel %vm434_vm0, %v3166_v3, 0.0 }
 0x711   : > { %v3169_v44 = vadd.f32 %v2591_v4, %v1580_v0  ;;  %v1597_v7 = vsel %vm434_vm0, %v3163_v63, 0.0  ;;  %v2126_v4 = vld [vmem:[%s3367_s6] ss:$0 sm:$0xff] }
 0x712   : > { %1598 = vadd.xlane.f32.xlu0 %v1597_v7  ;;  %v1606_v23 = vsel %vm434_vm0, %v3176_v14, 0.0 }
 0x713   : > { %v1600_v54 = vsel %vm434_vm0, %v3169_v44, 0.0 }
 0x714   : > { %1601 = vadd.xlane.f32.xlu1 %v1600_v54 }
 0x716   : > { %1604 = vadd.xlane.f32.xlu0 %v1603_v16 }
 0x71a   : > { %1607 = vadd.xlane.f32.xlu0 %v1606_v23 }
 0x79f   : > { %v1599_v18 = vpop.xlane.xlu0 %1598 }
 0x7a0   : > { %v1609_v59 = vmul.f32 0.015625, %v1599_v18  ;;  %v2127_v18 = vld [vmem:[%s3368_s7] ss:$0 sm:$0xff] }
 0x7a1   : > { %v1602_v22 = vpop.xlane.xlu1 %1601 }
 0x7a2   : > { %v3183_v43 = vsub.f32 %v3163_v63, %v1609_v59  ;;  %v1610_v25 = vmul.f32 0.015625, %v1602_v22 }
 0x7a3   : > { %v1605_v46 = vpop.xlane.xlu0 %1604 }
 0x7a4   : > { %v3186_v26 = vsub.f32 %v3169_v44, %v1610_v25  ;;  %v1611_v1 = vmul.f32 0.015625, %v1605_v46  ;;  %v1617_v27 = vmul.f32 %v3183_v43, %v3183_v43 }
 0x7a6   : > { %v3191_v30 = vsub.f32 %v3166_v3, %v1611_v1  ;;  %v1621_v21 = vsel %vm434_vm0, %v1617_v27, 0.0  ;;  %v1618_v5 = vmul.f32 %v3186_v26, %v3186_v26 }
 0x7a7   : > { %1622 = vadd.xlane.f32.xlu0 %v1621_v21  ;;  %v1608_v31 = vpop.xlane.xlu0 %1607 }
 0x7a8   : > { %v1612_v32 = vmul.f32 0.015625, %v1608_v31  ;;  %v1624_v10 = vsel %vm434_vm0, %v1618_v5, 0.0  ;;  %v1619_v34 = vmul.f32 %v3191_v30, %v3191_v30 }
 0x7a9   : > { %1625 = vadd.xlane.f32.xlu1 %v1624_v10  ;;  %v2505_v10 = vld [vmem:[%s3371_s10 + $0x70] sm:$0xff]  }
 0x7aa   : > { %v3200_v24 = vsub.f32 %v3176_v14, %v1612_v32  ;;  %v1627_v35 = vsel %vm434_vm0, %v1619_v34, 0.0  ;;  %v2506_v34 = vld [vmem:[%s3371_s10 + $0x30] sm:$0xff]  }
 0x7ab   : > { %1628 = vadd.xlane.f32.xlu0 %v1627_v35  ;;  %v1683_v35 = vsub.s32 0, %v2973_v8 }
 0x7ac   : > { %v1620_v13 = vmul.f32 %v3200_v24, %v3200_v24 }
 0x7ae   : > { %v1630_v37 = vsel %vm434_vm0, %v1620_v13, 0.0  ;;  %v1679_v13 = vld [vmem:[%s3370_s9] sm:$0x3] }
 0x7af   : > { %1631 = vadd.xlane.f32.xlu1 %v1630_v37  ;;  %v1687_v37 = vsub.s32 1, %v2973_v8  ;;  %v1684_v17 = vrot.slane %v1679_v13, %v1683_v35 }
 0x7b1   : > { %v1688_v38 = vrot.slane %v1679_v13, %v1687_v37 }
 0x834   : > { %v1623_v51 = vpop.xlane.xlu0 %1622 }
 0x835   : > { %v1633_v52 = vmul.f32 0.015625, %v1623_v51 }
 0x836   : > { %v1626_v53 = vpop.xlane.xlu1 %1625 }
 0x837   : > { %v1637_v55 = vadd.f32 1e-05, %v1633_v52  ;;  %v1634_v56 = vmul.f32 0.015625, %v1626_v53 }
 0x838   : > { %v1629_v57 = vpop.xlane.xlu0 %1628 }
 0x839   : > { %2581 = vrsqrt.f32 %v1637_v55  ;;  %v1638_v60 = vadd.f32 1e-05, %v1634_v56  ;;  %v1635_v62 = vmul.f32 0.015625, %v1629_v57 }
 0x83b   : > { %2583 = vrsqrt.f32 %v1638_v60  ;;  %v1639_v6 = vadd.f32 1e-05, %v1635_v62 }
 0x83c   : > { %v1632_v50 = vpop.xlane.xlu1 %1631 }
 0x83d   : > { %2585 = vrsqrt.f32 %v1639_v6  ;;  %v1636_v0 = vmul.f32 0.015625, %v1632_v50 }
 0x83f   : > { %v1640_v2 = vadd.f32 1e-05, %v1636_v0 }
 0x841   : > { %2587 = vrsqrt.f32 %v1640_v2  ;;  %v2138_v2 = vld [vmem:[%s3372_s11] ss:$0 sm:$0xff] }
 0x843   : > { %v2582_v42 = vpop.eup %2581 }
 0x844   : > { %v1645_v7 = vmul.f32 %v2582_v42, %v3183_v43 }
 0x845   : > { %v2584_v54 = vpop.eup %2583 }
 0x846   : > { %v1655_v9 = vmul.f32 %v2126_v4, %v1645_v7  ;;  %v1646_v16 = vmul.f32 %v2584_v54, %v3186_v26 }
 0x847   : > { %v2586_v23 = vpop.eup %2585 }
 0x848   : > { %v1656_v59 = vmul.f32 %v2126_v4, %v1646_v16  ;;  %v1647_v22 = vmul.f32 %v2586_v23, %v3191_v30  ;;  %v1665_v25 = vadd.f32 %v2127_v18, %v1655_v9  ;;  %v2504_v30 = vld [vmem:[%s3371_s10 + $0x28] sm:$0xff]  }
 0x849   : > { %2211 = vmatpush3.bf16.msra.mxu0 %v2504_v30 }
 0x84a   : > { %v1666_v46 = vadd.f32 %v2127_v18, %v1656_v59  ;;  %v1657_v43 = vmul.f32 %v2126_v4, %v1647_v22  ;;  %2212 = vmatprep.subr.bf16.mxu0 %v2505_v10 }
 0x84b   : > { %v2588_v1 = vpop.eup %2587 }
 0x84c   : > { %v1648_v27 = vmul.f32 %v2588_v1, %v3200_v24  ;;  %v1669_v21 = vpack.c.bf16 %v1666_v46, %v1665_v25  ;;  %v1667_v31 = vadd.f32 %v2127_v18, %v1657_v43  ;;  %v2508_v24 = vld [vmem:[%s3371_s10 + $0x38] sm:$0xff]  }
 0x84d   : > { %2213 = vmatpush3.bf16.msra.mxu0 %v2506_v34 }
 0x84e   : > { %2136 = vmatmul.mubr.msk.bf16.vlgmr.msra.gmra.mrb[28].mxu1 %vm434_vm0, %v1669_v21  ;;  %v1658_v5 = vmul.f32 %v2126_v4, %v1648_v27 }
 0x84f   : > { %1779 = vmatprep.mubr.bf16.mxu1 %v2692_v36  ;;  %v2507_v36 = vld [vmem:[%s3371_s10 + $0x78] sm:$0xff]  }
 0x850   : > { %v1668_v26 = vadd.f32 %v2127_v18, %v1658_v5  ;;  %2214 = vmatprep.subr.bf16.mxu0 %v2507_v36 }
 0x851   : > { %2215 = vmatpush3.bf16.msra.mxu0 %v2508_v24 }
 0x852   : > { %v1670_v32 = vpack.c.bf16 %v1668_v26, %v1667_v31 }
 0x856   : > { %2137 = vmatmul.mubr.msk.bf16.gmra.mrb[32].mxu1 %vm434_vm0, %v1670_v32 }
 0x921   : > { %v1771_v39 = vpop.f32.mrb[28].mxu1 }
 0x922   : > { %v1772_v40 = vadd.f32 %v1771_v39, %v1684_v17  ;;  %v1773_v41 = vpop.f32.mrb[29].mxu1 }
 0x923   : > { %v1774_v11 = vadd.f32 %v1773_v41, %v1688_v38  ;;  %v1775_v20 = vpop.f32.mrb[30].mxu1 }
 0x924   : > { %v1776_v12 = vadd.f32 %v1775_v20, %v1684_v17  ;;  %v1777_v29 = vpop.f32.mrb[31].mxu1  ;;  %v1790_v33 = vmax.f32 %v1772_v40, 0.0 }
 0x925   : > { %v1778_v58 = vadd.f32 %v1777_v29, %v1688_v38  ;;  %v1791_v45 = vmax.f32 %v1774_v11, 0.0 }
 0x926   : > { %v1792_v28 = vmax.f32 %v1776_v12, 0.0 }
 0x927   : > { %v1793_v19 = vmax.f32 %v1778_v58, 0.0 }
 0x928   : > { %v1798_v47 = vpack.c.bf16 %v1792_v28, %v1790_v33 }
 0x929   : > { %v1799_v15 = vpack.c.bf16 %v1793_v19, %v1791_v45  ;;  %v1781_v48 = vpop.f32.mrb[32].mxu1 }
 0x92a   : > { %v1782_v49 = vadd.f32 %v1781_v48, %v1684_v17  ;;  %v1783_v61 = vpop.f32.mrb[33].mxu1 }
 0x92b   : > { %v1784_v8 = vadd.f32 %v1783_v61, %v1688_v38  ;;  %v1785_v51 = vpop.f32.mrb[34].mxu1  ;;  %1969 = vmatprep.mubr.bf16.mxu0 %v1799_v15 }
 0x92c   : > { %v1786_v52 = vadd.f32 %v1785_v51, %v1684_v17  ;;  %v1787_v53 = vpop.f32.mrb[35].mxu1  ;;  %1970 = vmatmul.mubr.bf16.vlgmr.msra.gmra.mrb[16].mxu0 %v1798_v47  ;;  %v1794_v56 = vmax.f32 %v1782_v49, 0.0 }
 0x92d   : > { %v1788_v55 = vadd.f32 %v1787_v53, %v1688_v38  ;;  %v1795_v60 = vmax.f32 %v1784_v8, 0.0 }
 0x92e   : > { %v1796_v57 = vmax.f32 %v1786_v52, 0.0 }
 0x92f   : > { %v1797_v62 = vmax.f32 %v1788_v55, 0.0 }
 0x930   : > { %v1800_v6 = vpack.c.bf16 %v1796_v57, %v1794_v56 }
 0x931   : > { %v1801_v50 = vpack.c.bf16 %v1797_v62, %v1795_v60 }
 0x933   : > { %1977 = vmatprep.mubr.bf16.mxu0 %v1801_v50 }
 0x934   : > { %1978 = vmatmul.mubr.bf16.gmra.mrb[20].mxu0 %v1800_v6 }
 0x9ff   : > { %v2216_v0 = vpop.f32.mrb[16].mxu0 }
 0xa00   : > { %v2217_v42 = vpop.f32.mrb[17].mxu0 }
 0xa01   : > { %v2218_v4 = vadd.f32 %v2217_v42, %v2216_v0  ;;  %v2219_v7 = vpop.f32.mrb[18].mxu0 }
 0xa02   : > { %v2220_v54 = vpop.f32.mrb[19].mxu0 }
 0xa03   : > { %v1972_v9 = vadd.f32 %v2218_v4, %v2138_v2  ;;  %v2221_v16 = vadd.f32 %v2220_v54, %v2219_v7 }
 0xa05   : > { %v1986_v23 = vadd.f32 %v1972_v9, %v3163_v63  ;;  %v1975_v18 = vadd.f32 %v2221_v16, %v2138_v2 }
 0xa07   : > { %1990 = vst.msk [vmem:[%s421_s17] sm:$0xff] %vm434_vm0, %v1986_v23  ;;  %v1987_v59 = vadd.f32 %v1975_v18, %v3169_v44  ;;  %v2222_v22 = vpop.f32.mrb[20].mxu0 }
 0xa08   : > { %v2223_v25 = vpop.f32.mrb[21].mxu0 }
 0xa09   : > { %1991 = vst.msk [vmem:[%s421_s17 + $0x8] sm:$0xff] %vm434_vm0, %v1987_v59  ;;  %v2224_v46 = vadd.f32 %v2223_v25, %v2222_v22  ;;  %v2225_v1 = vpop.f32.mrb[22].mxu0 }
 0xa0a   : > { %v2226_v27 = vpop.f32.mrb[23].mxu0 }
 0xa0b   : > { %v1980_v21 = vadd.f32 %v2224_v46, %v2138_v2  ;;  %v2227_v43 = vadd.f32 %v2226_v27, %v2225_v1 }
 0xa0d   : > { %v1988_v63 = vadd.f32 %v1980_v21, %v3166_v3  ;;  %v1983_v5 = vadd.f32 %v2227_v43, %v2138_v2 }
 0xa0f   : > { %1992 = vst.msk [vmem:[%s421_s17 + $0x10] sm:$0xff] %vm434_vm0, %v1988_v63  ;;  %v1989_v44 = vadd.f32 %v1983_v5, %v3176_v14 }
 0xa11   : > { %1993 = vst.msk [vmem:[%s421_s17 + $0x18] sm:$0xff] %vm434_vm0, %v1989_v44 }
 0xa12   : > { %2634 = shalt.err (!%p2631_p7)
}
 0xa13   : > { %s2635_s26 = scalar_lea.hbm %s3311_s23, 512  ;;  %s2639_s28 = scalar_lea.hbm %s3373_s12, 1024 }
 0xa14   : > { %p2636_p8 = scmp.ne.s32.totalorder %s3311_s23, %s2635_s26  ;;  %p2640_p1 = scmp.lt.u32.totalorder %s3311_s23, %s3373_s12 }
 0xa15   : > { %p2641_p0 = scmp.lt.u32.totalorder %s2639_s28, %s2635_s26  ;;  %p2643_p6 = scmp.lt.u32.totalorder %s2635_s26, %s3311_s23 }
 0xa16   : > { %p2637_p11 = pnand %p2636_p8, %p3387_p9 }
 0xa17   : > { %p2642_p5 = por %p2641_p0, %p2640_p1 }
 0xa18   : > { %p2638_p13 = pneg %p2637_p11 }
 0xa19   : > { %p2644_p10 = por %p2643_p6, %p2642_p5 }
 0xa1b   : > { %p2645_p12 = pnand %p2644_p10, %p2638_p13 }
 0xa1d   : > { %2648 = shalt.err (!%p2645_p12)
}
 0xa1e   : > { %s2702_s30 = smov 128   ;;  %s2703_s18 = smov 8  }
 0xa1f   : > { %2316 = dma.vmem_to_hbm [thread:$0]  (%p3387_p9), %s3313_s20, 512, %s3311_s23, %s3320_s25, %s2702_s30, %s2702_s30, %s2703_s18  }
 0xa20 PF: > { %p2328_p2 = scmp.ge.s32.totalorder %s2687_s24, 2  ;;  %s2023_s15 = sand.u32 1, %s2675_s21  }
 0xa21   : > { %p3388_p3 = scmp.ne.s32.totalorder %s3381_s14, 0  ;;  %s2024_s26 = scalar_lea.sflag [#allocation4], %s2023_s15 }
 0xa23   : > { %p2323_p4 = pnand %p2328_p2, %p3388_p3 }
 0xa25   : > { %2670 = dma.done.wait (!%p2323_p4), %s2024_s26, 512  }
 0xa26   : > { %2672 = vsyncadd (!%p2323_p4), %s2024_s26, 4294966784  ;;  %s3389_s17 = sld [smem:[#allocation8_spill]]  ;;  %s3390_s23 = sld [smem:[#allocation9_spill]] }
 0xa27   : > { %p23_p7 = scmp.ge.s32.totalorder %s2794_s27, 4   ;;  %s3391_s21 = smov %s2679_s22 }
 0xa28   : > { %s3393_s24 = smov %s2794_s27 }
 0xa29   :  { %25 = sbr.rel (!%p23_p7) target bundleno = 4 (0x4), region = 108 }
 0xa2c   : > { %s3392_s22 = smov %s3389_s17 }
 0xa30   :  { %2029 = vsyncpa [#allocation3], 1 }
 0xa31   :  { %2031 = vsyncpa [#allocation3 + $0x1], 1 }
 0xa32   :  { %2032 = vsyncpa [#allocation4], 1 }
 0xa33   :  { %2034 = vsyncpa [#allocation4 + $0x1], 1 }

</bundles_post_ra>
